<compile_context>
chip_gen: v5e
topology: v5e:2x2
jax: 0.10.0
libtpu: 0.0.40
codegen_flags: <defaults>
</compile_context>

<pallas_src>
from functools import partial

import jax
import jax.numpy as jnp
from jax.experimental import pallas as pl
from jax.experimental.pallas import tpu as pltpu


def _round_up(x: int, m: int) -> int:
    return ((x + m - 1) // m) * m


# ----------------------------------------------------------------------------
# AOL rescaling (matches rescale_kernel in the PyTorch module)
# ----------------------------------------------------------------------------
def rescale_kernel_jax(weight: jax.Array) -> jax.Array:
    """weight: (C_out, C_in, k1, k2) -> AOL-rescaled weight of same shape."""
    _, _, k1, k2 = weight.shape
    w_tp = jnp.transpose(weight, (1, 0, 2, 3))  # (C_in, C_out, k1, k2)
    v = jax.lax.conv_general_dilated(
        w_tp, w_tp,
        window_strides=(1, 1),
        padding=((k1 - 1, k1 - 1), (k2 - 1, k2 - 1)),
        dimension_numbers=("NCHW", "OIHW", "NCHW"),
    )  # (C_in, C_in, 2k1-1, 2k2-1)
    v_scaled = jnp.sum(jnp.abs(v), axis=(1, 2, 3))            # (C_in,)
    denom = jnp.sqrt(v_scaled + 1e-6)[None, :, None, None]    # (1, C_in, 1, 1)
    return weight / denom


# ----------------------------------------------------------------------------
# Pallas kernel: one (batch n, output-row-tile t) grid step.
# ----------------------------------------------------------------------------
def _conv_kernel(xm_ref, xh_ref, w_ref, b_ref, o_ref, col_ref, *,
                 TH, Wo_pad, KH, KW, C_in_pad):
    # xm_ref : (1, TH,   Wp, C_in_pad)   main padded-input rows [t*TH, (t+1)*TH)
    # xh_ref : (1, HALO, Wp, C_in_pad)   halo rows             [(t+1)*TH, ...)
    # w_ref  : (KH*KW*C_in_pad, C_out_pad)  im2col weight matrix (resident)
    # b_ref  : (1, C_out_pad)               bias (f32)
    # o_ref  : (1, TH*Wo_pad, C_out_pad)    lane-dense output block
    # col_ref: (TH, Wo_pad, KH*KW*C_in_pad) im2col VMEM scratch

    # --- build the im2col patch matrix once per tile (unrolled tap loop) ----
    for kh in range(KH):
        for kw in range(KW):
            c0 = (kh * KW + kw) * C_in_pad
            c1 = c0 + C_in_pad
            # Output row i of this tile needs padded row t*TH + i + kh:
            # rows [kh, TH) come from the main block, rows [TH, TH+kh) from
            # the halo block.  Lane slice c0:c1 is 128-aligned (full vst).
            col_ref[0:TH - kh, :, c0:c1] = xm_ref[0, kh:TH, kw:kw + Wo_pad, :]
            if kh > 0:
                col_ref[TH - kh:TH, :, c0:c1] = xh_ref[0, 0:kh, kw:kw + Wo_pad, :]

    # --- single fused MXU matmul, f32 accumulation, bias folded in ----------
    col = col_ref[...].reshape(TH * Wo_pad, KH * KW * C_in_pad)
    acc = jnp.dot(col, w_ref[...], preferred_element_type=jnp.float32)
    acc = acc + b_ref[...]
    o_ref[0] = acc.astype(o_ref.dtype)


# ----------------------------------------------------------------------------
# Public wrapper: NCHW / OIHW in, NCHW out (torch.nn.functional.conv2d match).
# ----------------------------------------------------------------------------
def aol_conv2d(x_nchw: jax.Array,
               weight: jax.Array,
               bias: jax.Array,
               padding=None,
               *,
               tile_h: int | None = None,
               compute_dtype=None,
               vmem_budget_bytes: int = 32 * 1024 * 1024) -> jax.Array:
    """Forward pass of AOLConv2d. x_nchw: (N, C_in, H, W) -> (N, C_out, Ho, Wo)."""
    N, C_in, H, W = x_nchw.shape
    C_out, C_in_w, KH, KW = weight.shape
    assert C_in == C_in_w
    if padding is None:
        # hp.padding default: "same" for odd kernels (standard simple_conv setup)
        padding = (KH // 2, KW // 2)
    ph, pw = padding

    out_dtype = x_nchw.dtype
    if compute_dtype is None:
        compute_dtype = out_dtype          # bf16 recommended on v6e / v7x
    cbytes = jnp.dtype(compute_dtype).itemsize
    obytes = jnp.dtype(out_dtype).itemsize

    # ---- AOL rescale (computed once; cached in the PyTorch module) ---------
    kernel = rescale_kernel_jax(weight.astype(jnp.float32))

    # ---- padded / lane-dense sizes ------------------------------------------
    Ho = H + 2 * ph - KH + 1
    Wo = W + 2 * pw - KW + 1
    assert Ho > 0 and Wo > 0
    C_in_pad = _round_up(C_in, 128)        # lane-dense contraction channels
    C_out_pad = _round_up(C_out, 128)      # lane-dense output (full-width vst)
    sub = 8 if cbytes == 4 else (16 if cbytes == 2 else 32)
    Wo_pad = _round_up(Wo, sub)            # keeps in-kernel reshapes layout-trivial
    Wp = Wo_pad + KW - 1                   # padded image width
    Kdim = KH * KW * C_in_pad              # im2col contraction depth

    HALO = max(8, _round_up(KH - 1, 8))    # 8-row-aligned halo block height

    # ---- row-tile height: biggest multiple of HALO that fits the VMEM budget
    if tile_h is None:
        row_bytes = (2 * Wp * C_in_pad * cbytes          # input rows (double-buffered)
                     + Wo_pad * Kdim * cbytes            # im2col scratch rows
                     + 2 * Wo_pad * C_out_pad * obytes)  # output rows (double-buffered)
        fixed = (Kdim * C_out_pad * cbytes               # resident weight matrix
                 + 2 * HALO * Wp * C_in_pad * cbytes)    # halo blocks
        avail = max(vmem_budget_bytes - fixed, 8 * row_bytes)
        tile_h = max(8, min(512, (avail // row_bytes) // 8 * 8))
    TH = min(int(tile_h), _round_up(Ho, 8))
    TH = max(_round_up(TH, HALO), HALO)    # halo alignment: HALO | TH
    assert TH % 8 == 0 and TH >= KH - 1

    Ho_pad = _round_up(Ho, TH)
    nT = Ho_pad // TH
    Hp = Ho_pad + HALO                     # rows of padded image we materialize

    # ---- padded NHWC input with lane-padded channels -------------------------
    x = jnp.transpose(x_nchw, (0, 2, 3, 1)).astype(compute_dtype)   # (N,H,W,C_in)
    xpad = jnp.pad(x, ((0, 0),
                       (ph, Hp - H - ph),
                       (pw, Wp - W - pw),
                       (0, C_in_pad - C_in)))                       # (N,Hp,Wp,Cip)

    # ---- im2col weight matrix (KH*KW*C_in_pad, C_out_pad), lane-dense -------
    w_hwio = jnp.transpose(kernel, (2, 3, 1, 0))                    # (KH,KW,Ci,Co)
    w_hwio = jnp.pad(w_hwio, ((0, 0), (0, 0),
                              (0, C_in_pad - C_in), (0, C_out_pad - C_out)))
    wmat = w_hwio.reshape(Kdim, C_out_pad).astype(compute_dtype)
    bvec = jnp.pad(bias.astype(jnp.float32),
                   (0, C_out_pad - C_out)).reshape(1, C_out_pad)

    # ---- cost estimate + VMEM limit ------------------------------------------
    flops = 2 * N * Ho_pad * Wo_pad * Kdim * C_out_pad
    bytes_accessed = (int(xpad.size) * cbytes * (TH + HALO) // TH
                      + int(wmat.size) * cbytes + int(bvec.size) * 4
                      + N * Ho_pad * Wo_pad * C_out_pad * obytes)
    vmem_block_bytes = (2 * TH * Wp * C_in_pad * cbytes
                        + 2 * HALO * Wp * C_in_pad * cbytes
                        + Kdim * C_out_pad * cbytes + C_out_pad * 4
                        + 2 * TH * Wo_pad * C_out_pad * obytes
                        + TH * Wo_pad * Kdim * cbytes)
    vmem_limit = int(min(max(vmem_block_bytes * 3 // 2, 32 * 1024 * 1024),
                         64 * 1024 * 1024))

    kern = partial(_conv_kernel, TH=TH, Wo_pad=Wo_pad, KH=KH, KW=KW,
                   C_in_pad=C_in_pad)

    out_flat = pl.pallas_call(
        kern,
        out_shape=jax.ShapeDtypeStruct((N, Ho_pad * Wo_pad, C_out_pad), out_dtype),
        grid_spec=pltpu.PrefetchScalarGridSpec(
            num_scalar_prefetch=0,
            grid=(N, nT),
            in_specs=[
                # main rows of this tile: [t*TH, (t+1)*TH)
                pl.BlockSpec((1, TH, Wp, C_in_pad),
                             lambda n, t: (n, t, 0, 0)),
                # halo rows (8-row aligned view of the same array): [(t+1)*TH, ...)
                pl.BlockSpec((1, HALO, Wp, C_in_pad),
                             lambda n, t: (n, (t + 1) * (TH // HALO), 0, 0)),
                # full im2col weight matrix, resident across all grid steps
                pl.BlockSpec((Kdim, C_out_pad), lambda n, t: (0, 0)),
                # bias
                pl.BlockSpec((1, C_out_pad), lambda n, t: (0, 0)),
            ],
            out_specs=pl.BlockSpec((1, TH * Wo_pad, C_out_pad),
                                   lambda n, t: (n, t, 0)),
            scratch_shapes=[pltpu.VMEM((TH, Wo_pad, Kdim), compute_dtype)],
        ),
        compiler_params=pltpu.CompilerParams(
            dimension_semantics=("parallel", "parallel"),
            vmem_limit_bytes=vmem_limit,
        ),
        cost_estimate=pl.CostEstimate(flops=flops, transcendentals=0,
                                      bytes_accessed=bytes_accessed),
    )(xpad, xpad, wmat, bvec)

    out = out_flat.reshape(N, Ho_pad, Wo_pad, C_out_pad)[:, :Ho, :Wo, :C_out]
    return jnp.transpose(out, (0, 3, 1, 2))           # back to NCHW


# ----------------------------------------------------------------------------
# Main
# ----------------------------------------------------------------------------
if __name__ == "__main__":
    key = jax.random.PRNGKey(0)
    k_x, k_w, k_b, k_x2, k_w2, k_b2 = jax.random.split(key, 6)

    def ref_conv(x, weight, bias, ph, pw):
        resc = rescale_kernel_jax(weight)
        return jax.lax.conv_general_dilated(
            x, resc, (1, 1), ((ph, ph), (pw, pw)),
            dimension_numbers=("NCHW", "OIHW", "NCHW"),
        ) + bias[None, :, None, None]

    # Config A: module-typical small shapes (batch=2, channels=4, spatial=16).
    N, C_in, C_out, H, W, K = 2, 4, 4, 16, 16, 3
    x = jax.random.normal(k_x, (N, C_in, H, W), dtype=jnp.float32)
    weight = 0.1 * jax.random.normal(k_w, (C_out, C_in, K, K), dtype=jnp.float32)
    bias = 0.01 * jax.random.normal(k_b, (C_out,), dtype=jnp.float32)
    ref = ref_conv(x, weight, bias, K // 2, K // 2)

    # (A1) f32 operands, default (VMEM-budget-driven) row tile.
    out = jax.block_until_ready(aol_conv2d(x, weight, bias))
    assert out.shape == (N, C_out, H, W)
    assert jnp.allclose(out, ref, atol=1e-4, rtol=1e-4), "A1 mismatch vs reference"

    # (A2) bf16 operands (v6e/v7x recommendation), explicit 8-row tiles so the
    #      multi-tile halo path is exercised; accumulation stays f32.
    out_bf16 = jax.block_until_ready(
        aol_conv2d(x, weight, bias, tile_h=8, compute_dtype=jnp.bfloat16))
    assert out_bf16.shape == (N, C_out, H, W)
    assert jnp.allclose(out_bf16, ref, atol=3e-2, rtol=3e-2), "A2 (bf16) mismatch"

    # Config B: odd spatial / channel sizes exercise every padding path.
    N2, C_in2, C_out2, H2, W2 = 1, 3, 6, 21, 19
    x2 = jax.random.normal(k_x2, (N2, C_in2, H2, W2), dtype=jnp.float32)
    w2 = 0.1 * jax.random.normal(k_w2, (C_out2, C_in2, K, K), dtype=jnp.float32)
    bias2 = 0.01 * jax.random.normal(k_b2, (C_out2,), dtype=jnp.float32)
    out2 = jax.block_until_ready(aol_conv2d(x2, w2, bias2, tile_h=8))
    ref2 = ref_conv(x2, w2, bias2, K // 2, K // 2)
    assert out2.shape == (N2, C_out2, H2, W2)
    assert jnp.allclose(out2, ref2, atol=1e-4, rtol=1e-4), "B mismatch vs reference"

    print("KERNEL_OK")
</pallas_src>

<mosaic_0001>
module attributes {stable_mosaic.version = 11 : i64} {
  func.func @_conv_kernel(%arg0: i32, %arg1: i32, %arg2: memref<1x16x18x128xf32, #tpu.memory_space<vmem>>, %arg3: memref<1x8x18x128xf32, #tpu.memory_space<vmem>>, %arg4: memref<1152x128xf32, #tpu.memory_space<vmem>>, %arg5: memref<1x128xf32, #tpu.memory_space<vmem>>, %arg6: memref<1x256x128xf32, #tpu.memory_space<vmem>>, %arg7: memref<16x16x1152xf32, #tpu.memory_space<vmem>>) attributes {dimension_semantics = [#tpu.dimension_semantics<parallel>, #tpu.dimension_semantics<parallel>], iteration_bounds = array<i64: 2, 1>, scalar_prefetch = 0 : i64, scratch_operands = 1 : i64, tpu.core_type = #tpu.core_type<tc>, window_params = [{transform_indices = @transform_0, window_bounds = array<i64: 1, 16, 18, 128>}, {transform_indices = @transform_1, window_bounds = array<i64: 1, 8, 18, 128>}, {pipeline_mode = #tpu.pipeline_mode<synchronous>, transform_indices = @transform_2, window_bounds = array<i64: 1152, 128>}, {pipeline_mode = #tpu.pipeline_mode<synchronous>, transform_indices = @transform_3, window_bounds = array<i64: 1, 128>}, {transform_indices = @transform_4, window_bounds = array<i64: 1, 256, 128>}]} {
    %c0 = arith.constant 0 : index
    %c0_0 = arith.constant 0 : index
    %c0_1 = arith.constant 0 : index
    %c0_2 = arith.constant 0 : index
    %0 = vector.load %arg2[%c0, %c0_0, %c0_1, %c0_2] : memref<1x16x18x128xf32, #tpu.memory_space<vmem>>, vector<1x16x16x128xf32>
    %1 = vector.shape_cast %0 : vector<1x16x16x128xf32> to vector<16x16x128xf32>
    %c0_3 = arith.constant 0 : index
    %c0_4 = arith.constant 0 : index
    %c0_5 = arith.constant 0 : index
    %2 = vector.load %arg7[%c0_3, %c0_4, %c0_5] : memref<16x16x1152xf32, #tpu.memory_space<vmem>>, vector<16x16x128xf32>
    tpu.vector_store %arg7[%c0_3, %c0_4, %c0_5], %1 {strides = array<i32>} : memref<16x16x1152xf32, #tpu.memory_space<vmem>>, vector<16x16x128xf32>,
    %c0_6 = arith.constant 0 : index
    %c0_7 = arith.constant 0 : index
    %c1 = arith.constant 1 : index
    %c0_8 = arith.constant 0 : index
    %3 = vector.load %arg2[%c0_6, %c0_7, %c1, %c0_8] : memref<1x16x18x128xf32, #tpu.memory_space<vmem>>, vector<1x16x16x128xf32>
    %4 = vector.shape_cast %3 : vector<1x16x16x128xf32> to vector<16x16x128xf32>
    %c0_9 = arith.constant 0 : index
    %c0_10 = arith.constant 0 : index
    %c128 = arith.constant 128 : index
    %5 = vector.load %arg7[%c0_9, %c0_10, %c128] : memref<16x16x1152xf32, #tpu.memory_space<vmem>>, vector<16x16x128xf32>
    tpu.vector_store %arg7[%c0_9, %c0_10, %c128], %4 {strides = array<i32>} : memref<16x16x1152xf32, #tpu.memory_space<vmem>>, vector<16x16x128xf32>,
    %c0_11 = arith.constant 0 : index
    %c0_12 = arith.constant 0 : index
    %c2 = arith.constant 2 : index
    %c0_13 = arith.constant 0 : index
    %6 = vector.load %arg2[%c0_11, %c0_12, %c2, %c0_13] : memref<1x16x18x128xf32, #tpu.memory_space<vmem>>, vector<1x16x16x128xf32>
    %7 = vector.shape_cast %6 : vector<1x16x16x128xf32> to vector<16x16x128xf32>
    %c0_14 = arith.constant 0 : index
    %c0_15 = arith.constant 0 : index
    %c256 = arith.constant 256 : index
    %8 = vector.load %arg7[%c0_14, %c0_15, %c256] : memref<16x16x1152xf32, #tpu.memory_space<vmem>>, vector<16x16x128xf32>
    tpu.vector_store %arg7[%c0_14, %c0_15, %c256], %7 {strides = array<i32>} : memref<16x16x1152xf32, #tpu.memory_space<vmem>>, vector<16x16x128xf32>,
    %c0_16 = arith.constant 0 : index
    %c1_17 = arith.constant 1 : index
    %c0_18 = arith.constant 0 : index
    %c0_19 = arith.constant 0 : index
    %9 = vector.load %arg2[%c0_16, %c1_17, %c0_18, %c0_19] : memref<1x16x18x128xf32, #tpu.memory_space<vmem>>, vector<1x15x16x128xf32>
    %10 = vector.shape_cast %9 : vector<1x15x16x128xf32> to vector<15x16x128xf32>
    %c0_20 = arith.constant 0 : index
    %c0_21 = arith.constant 0 : index
    %c384 = arith.constant 384 : index
    %11 = vector.load %arg7[%c0_20, %c0_21, %c384] : memref<16x16x1152xf32, #tpu.memory_space<vmem>>, vector<15x16x128xf32>
    tpu.vector_store %arg7[%c0_20, %c0_21, %c384], %10 {strides = array<i32>} : memref<16x16x1152xf32, #tpu.memory_space<vmem>>, vector<15x16x128xf32>,
    %c0_22 = arith.constant 0 : index
    %c0_23 = arith.constant 0 : index
    %c0_24 = arith.constant 0 : index
    %c0_25 = arith.constant 0 : index
    %12 = vector.load %arg3[%c0_22, %c0_23, %c0_24, %c0_25] : memref<1x8x18x128xf32, #tpu.memory_space<vmem>>, vector<1x1x16x128xf32>
    %13 = vector.shape_cast %12 : vector<1x1x16x128xf32> to vector<1x16x128xf32>
    %c15 = arith.constant 15 : index
    %c0_26 = arith.constant 0 : index
    %c384_27 = arith.constant 384 : index
    %14 = vector.load %arg7[%c15, %c0_26, %c384_27] : memref<16x16x1152xf32, #tpu.memory_space<vmem>>, vector<1x16x128xf32>
    tpu.vector_store %arg7[%c15, %c0_26, %c384_27], %13 {strides = array<i32>} : memref<16x16x1152xf32, #tpu.memory_space<vmem>>, vector<1x16x128xf32>,
    %c0_28 = arith.constant 0 : index
    %c1_29 = arith.constant 1 : index
    %c1_30 = arith.constant 1 : index
    %c0_31 = arith.constant 0 : index
    %15 = vector.load %arg2[%c0_28, %c1_29, %c1_30, %c0_31] : memref<1x16x18x128xf32, #tpu.memory_space<vmem>>, vector<1x15x16x128xf32>
    %16 = vector.shape_cast %15 : vector<1x15x16x128xf32> to vector<15x16x128xf32>
    %c0_32 = arith.constant 0 : index
    %c0_33 = arith.constant 0 : index
    %c512 = arith.constant 512 : index
    %17 = vector.load %arg7[%c0_32, %c0_33, %c512] : memref<16x16x1152xf32, #tpu.memory_space<vmem>>, vector<15x16x128xf32>
    tpu.vector_store %arg7[%c0_32, %c0_33, %c512], %16 {strides = array<i32>} : memref<16x16x1152xf32, #tpu.memory_space<vmem>>, vector<15x16x128xf32>,
    %c0_34 = arith.constant 0 : index
    %c0_35 = arith.constant 0 : index
    %c1_36 = arith.constant 1 : index
    %c0_37 = arith.constant 0 : index
    %18 = vector.load %arg3[%c0_34, %c0_35, %c1_36, %c0_37] : memref<1x8x18x128xf32, #tpu.memory_space<vmem>>, vector<1x1x16x128xf32>
    %19 = vector.shape_cast %18 : vector<1x1x16x128xf32> to vector<1x16x128xf32>
    %c15_38 = arith.constant 15 : index
    %c0_39 = arith.constant 0 : index
    %c512_40 = arith.constant 512 : index
    %20 = vector.load %arg7[%c15_38, %c0_39, %c512_40] : memref<16x16x1152xf32, #tpu.memory_space<vmem>>, vector<1x16x128xf32>
    tpu.vector_store %arg7[%c15_38, %c0_39, %c512_40], %19 {strides = array<i32>} : memref<16x16x1152xf32, #tpu.memory_space<vmem>>, vector<1x16x128xf32>,
    %c0_41 = arith.constant 0 : index
    %c1_42 = arith.constant 1 : index
    %c2_43 = arith.constant 2 : index
    %c0_44 = arith.constant 0 : index
    %21 = vector.load %arg2[%c0_41, %c1_42, %c2_43, %c0_44] : memref<1x16x18x128xf32, #tpu.memory_space<vmem>>, vector<1x15x16x128xf32>
    %22 = vector.shape_cast %21 : vector<1x15x16x128xf32> to vector<15x16x128xf32>
    %c0_45 = arith.constant 0 : index
    %c0_46 = arith.constant 0 : index
    %c640 = arith.constant 640 : index
    %23 = vector.load %arg7[%c0_45, %c0_46, %c640] : memref<16x16x1152xf32, #tpu.memory_space<vmem>>, vector<15x16x128xf32>
    tpu.vector_store %arg7[%c0_45, %c0_46, %c640], %22 {strides = array<i32>} : memref<16x16x1152xf32, #tpu.memory_space<vmem>>, vector<15x16x128xf32>,
    %c0_47 = arith.constant 0 : index
    %c0_48 = arith.constant 0 : index
    %c2_49 = arith.constant 2 : index
    %c0_50 = arith.constant 0 : index
    %24 = vector.load %arg3[%c0_47, %c0_48, %c2_49, %c0_50] : memref<1x8x18x128xf32, #tpu.memory_space<vmem>>, vector<1x1x16x128xf32>
    %25 = vector.shape_cast %24 : vector<1x1x16x128xf32> to vector<1x16x128xf32>
    %c15_51 = arith.constant 15 : index
    %c0_52 = arith.constant 0 : index
    %c640_53 = arith.constant 640 : index
    %26 = vector.load %arg7[%c15_51, %c0_52, %c640_53] : memref<16x16x1152xf32, #tpu.memory_space<vmem>>, vector<1x16x128xf32>
    tpu.vector_store %arg7[%c15_51, %c0_52, %c640_53], %25 {strides = array<i32>} : memref<16x16x1152xf32, #tpu.memory_space<vmem>>, vector<1x16x128xf32>,
    %c0_54 = arith.constant 0 : index
    %c2_55 = arith.constant 2 : index
    %c0_56 = arith.constant 0 : index
    %c0_57 = arith.constant 0 : index
    %27 = vector.load %arg2[%c0_54, %c2_55, %c0_56, %c0_57] : memref<1x16x18x128xf32, #tpu.memory_space<vmem>>, vector<1x14x16x128xf32>
    %28 = vector.shape_cast %27 : vector<1x14x16x128xf32> to vector<14x16x128xf32>
    %c0_58 = arith.constant 0 : index
    %c0_59 = arith.constant 0 : index
    %c768 = arith.constant 768 : index
    %29 = vector.load %arg7[%c0_58, %c0_59, %c768] : memref<16x16x1152xf32, #tpu.memory_space<vmem>>, vector<14x16x128xf32>
    tpu.vector_store %arg7[%c0_58, %c0_59, %c768], %28 {strides = array<i32>} : memref<16x16x1152xf32, #tpu.memory_space<vmem>>, vector<14x16x128xf32>,
    %c0_60 = arith.constant 0 : index
    %c0_61 = arith.constant 0 : index
    %c0_62 = arith.constant 0 : index
    %c0_63 = arith.constant 0 : index
    %30 = vector.load %arg3[%c0_60, %c0_61, %c0_62, %c0_63] : memref<1x8x18x128xf32, #tpu.memory_space<vmem>>, vector<1x2x16x128xf32>
    %31 = vector.shape_cast %30 : vector<1x2x16x128xf32> to vector<2x16x128xf32>
    %c14 = arith.constant 14 : index
    %c0_64 = arith.constant 0 : index
    %c768_65 = arith.constant 768 : index
    %32 = vector.load %arg7[%c14, %c0_64, %c768_65] : memref<16x16x1152xf32, #tpu.memory_space<vmem>>, vector<2x16x128xf32>
    tpu.vector_store %arg7[%c14, %c0_64, %c768_65], %31 {strides = array<i32>} : memref<16x16x1152xf32, #tpu.memory_space<vmem>>, vector<2x16x128xf32>,
    %c0_66 = arith.constant 0 : index
    %c2_67 = arith.constant 2 : index
    %c1_68 = arith.constant 1 : index
    %c0_69 = arith.constant 0 : index
    %33 = vector.load %arg2[%c0_66, %c2_67, %c1_68, %c0_69] : memref<1x16x18x128xf32, #tpu.memory_space<vmem>>, vector<1x14x16x128xf32>
    %34 = vector.shape_cast %33 : vector<1x14x16x128xf32> to vector<14x16x128xf32>
    %c0_70 = arith.constant 0 : index
    %c0_71 = arith.constant 0 : index
    %c896 = arith.constant 896 : index
    %35 = vector.load %arg7[%c0_70, %c0_71, %c896] : memref<16x16x1152xf32, #tpu.memory_space<vmem>>, vector<14x16x128xf32>
    tpu.vector_store %arg7[%c0_70, %c0_71, %c896], %34 {strides = array<i32>} : memref<16x16x1152xf32, #tpu.memory_space<vmem>>, vector<14x16x128xf32>,
    %c0_72 = arith.constant 0 : index
    %c0_73 = arith.constant 0 : index
    %c1_74 = arith.constant 1 : index
    %c0_75 = arith.constant 0 : index
    %36 = vector.load %arg3[%c0_72, %c0_73, %c1_74, %c0_75] : memref<1x8x18x128xf32, #tpu.memory_space<vmem>>, vector<1x2x16x128xf32>
    %37 = vector.shape_cast %36 : vector<1x2x16x128xf32> to vector<2x16x128xf32>
    %c14_76 = arith.constant 14 : index
    %c0_77 = arith.constant 0 : index
    %c896_78 = arith.constant 896 : index
    %38 = vector.load %arg7[%c14_76, %c0_77, %c896_78] : memref<16x16x1152xf32, #tpu.memory_space<vmem>>, vector<2x16x128xf32>
    tpu.vector_store %arg7[%c14_76, %c0_77, %c896_78], %37 {strides = array<i32>} : memref<16x16x1152xf32, #tpu.memory_space<vmem>>, vector<2x16x128xf32>,
    %c0_79 = arith.constant 0 : index
    %c2_80 = arith.constant 2 : index
    %c2_81 = arith.constant 2 : index
    %c0_82 = arith.constant 0 : index
    %39 = vector.load %arg2[%c0_79, %c2_80, %c2_81, %c0_82] : memref<1x16x18x128xf32, #tpu.memory_space<vmem>>, vector<1x14x16x128xf32>
    %40 = vector.shape_cast %39 : vector<1x14x16x128xf32> to vector<14x16x128xf32>
    %c0_83 = arith.constant 0 : index
    %c0_84 = arith.constant 0 : index
    %c1024 = arith.constant 1024 : index
    %41 = vector.load %arg7[%c0_83, %c0_84, %c1024] : memref<16x16x1152xf32, #tpu.memory_space<vmem>>, vector<14x16x128xf32>
    tpu.vector_store %arg7[%c0_83, %c0_84, %c1024], %40 {strides = array<i32>} : memref<16x16x1152xf32, #tpu.memory_space<vmem>>, vector<14x16x128xf32>,
    %c0_85 = arith.constant 0 : index
    %c0_86 = arith.constant 0 : index
    %c2_87 = arith.constant 2 : index
    %c0_88 = arith.constant 0 : index
    %42 = vector.load %arg3[%c0_85, %c0_86, %c2_87, %c0_88] : memref<1x8x18x128xf32, #tpu.memory_space<vmem>>, vector<1x2x16x128xf32>
    %43 = vector.shape_cast %42 : vector<1x2x16x128xf32> to vector<2x16x128xf32>
    %c14_89 = arith.constant 14 : index
    %c0_90 = arith.constant 0 : index
    %c1024_91 = arith.constant 1024 : index
    %44 = vector.load %arg7[%c14_89, %c0_90, %c1024_91] : memref<16x16x1152xf32, #tpu.memory_space<vmem>>, vector<2x16x128xf32>
    tpu.vector_store %arg7[%c14_89, %c0_90, %c1024_91], %43 {strides = array<i32>} : memref<16x16x1152xf32, #tpu.memory_space<vmem>>, vector<2x16x128xf32>,
    %c0_92 = arith.constant 0 : index
    %c0_93 = arith.constant 0 : index
    %c0_94 = arith.constant 0 : index
    %45 = vector.load %arg7[%c0_92, %c0_93, %c0_94] : memref<16x16x1152xf32, #tpu.memory_space<vmem>>, vector<16x16x1152xf32>
    %46 = vector.shape_cast %45 : vector<16x16x1152xf32> to vector<256x1152xf32>
    %c0_95 = arith.constant 0 : index
    %c0_96 = arith.constant 0 : index
    %47 = vector.load %arg4[%c0_95, %c0_96] : memref<1152x128xf32, #tpu.memory_space<vmem>>, vector<1152x128xf32>
    %cst = arith.constant dense<0.000000e+00> : vector<256x128xf32>
    %48 = tpu.matmul %46, %47, %cst {dimension_numbers = #tpu.dot_dimension_numbers<[1], [0], [0], [1], [0, 0, 1, 1], [], []>} : vector<256x1152xf32>, vector<1152x128xf32>, vector<256x128xf32> -> vector<256x128xf32>
    %c0_97 = arith.constant 0 : index
    %c0_98 = arith.constant 0 : index
    %49 = vector.load %arg5[%c0_97, %c0_98] : memref<1x128xf32, #tpu.memory_space<vmem>>, vector<1x128xf32>
    %50 = vector.broadcast %49 : vector<1x128xf32> to vector<256x128xf32>
    %51 = arith.addf %48, %50 : vector<256x128xf32>
    %c0_99 = arith.constant 0 : index
    %c0_100 = arith.constant 0 : index
    %c0_101 = arith.constant 0 : index
    %52 = vector.load %arg6[%c0_99, %c0_100, %c0_101] : memref<1x256x128xf32, #tpu.memory_space<vmem>>, vector<1x256x128xf32>
    %53 = vector.shape_cast %52 : vector<1x256x128xf32> to vector<256x128xf32>
    %54 = vector.shape_cast %51 : vector<256x128xf32> to vector<1x256x128xf32>
    tpu.vector_store %arg6[%c0_99, %c0_100, %c0_101], %54 {strides = array<i32>} : memref<1x256x128xf32, #tpu.memory_space<vmem>>, vector<1x256x128xf32>,
    return
  }
  func.func @transform_0(%arg0: i32, %arg1: i32) -> (i32, i32, i32, i32) {
    %c0_i32 = arith.constant 0 : i32
    %c0_i32_0 = arith.constant 0 : i32
    %c0_i32_1 = arith.constant 0 : i32
    return %arg0, %arg1, %c0_i32, %c0_i32_0 : i32, i32, i32, i32
  }
  func.func @transform_1(%arg0: i32, %arg1: i32) -> (i32, i32, i32, i32) {
    %c1_i32 = arith.constant 1 : i32
    %0 = arith.addi %arg1, %c1_i32 : i32
    %c2_i32 = arith.constant 2 : i32
    %1 = arith.muli %0, %c2_i32 : i32
    %c0_i32 = arith.constant 0 : i32
    %c0_i32_0 = arith.constant 0 : i32
    %c0_i32_1 = arith.constant 0 : i32
    return %arg0, %1, %c0_i32, %c0_i32_0 : i32, i32, i32, i32
  }
  func.func @transform_2(%arg0: i32, %arg1: i32) -> (i32, i32) {
    %c0_i32 = arith.constant 0 : i32
    %c0_i32_0 = arith.constant 0 : i32
    %c0_i32_1 = arith.constant 0 : i32
    return %c0_i32, %c0_i32_0 : i32, i32
  }
  func.func @transform_3(%arg0: i32, %arg1: i32) -> (i32, i32) {
    %c0_i32 = arith.constant 0 : i32
    %c0_i32_0 = arith.constant 0 : i32
    %c0_i32_1 = arith.constant 0 : i32
    return %c0_i32, %c0_i32_0 : i32, i32
  }
  func.func @transform_4(%arg0: i32, %arg1: i32) -> (i32, i32, i32) {
    %c0_i32 = arith.constant 0 : i32
    %c0_i32_0 = arith.constant 0 : i32
    return %arg0, %arg1, %c0_i32 : i32, i32, i32
  }
}

</mosaic_0001>

<bundles_post_ra>
// kernel: tpu_custom_call.1
= control target key start
LH: loop header
LB: loop body
LE: loop exit
PB: predicated region body
PF: predicated region fallthrough
CT: control target
= control target key end

     0   :  { %9 = vsyncpa [#allocation4], 0  ;;  %s4094_s0 = inlined_call_operand.vmem [shape: f32[2,24,18,128], index: 0, kind: input, shape index: {}]   ;;  %s4095_s1 = inlined_call_operand.vmem [shape: f32[2,24,18,128], index: 1, kind: input, shape index: {}]   ;;  %s4096_s2 = inlined_call_operand.vmem [shape: f32[1152,128], index: 2, kind: input, shape index: {}]   ;;  %s4097_s3 = inlined_call_operand.vmem [shape: f32[1,128], index: 3, kind: input, shape index: {}]   ;;  %s4098_s4 = inlined_call_operand.hbm [shape: f32[2,256,128], index: 4, kind: output, shape index: {}]  }
   0x1   :  { %11 = vsyncpa [#allocation4 + $0x1], 0  ;;  %s2900_s15 = smov 0   ;;  %s2902_s16 = smov 0  }
   0x2   :  { %s2904_s17 = smov 0   ;;  %s2906_s18 = smov 0  }
   0x3   :  { %s2908_s19 = smov 0   ;;  %s2910_s20 = smov 0  }
   0x4 LB: > { %s2494_s21 = sadd.s32 4294967295, %s2871_s20   ;;  %s2495_s22 = sadd.s32 4294967294, %s2871_s20   ;;  %s2871_s20 = sphi %s2910_s20, %s17_s20   ;;  %s2867_s19 = sphi %s2908_s19, %s4134_s19   ;;  %s2863_s18 = sphi %s2906_s18, %s4133_s18   ;;  %s2859_s17 = sphi %s2904_s17, %s4132_s17   ;;  %s2855_s16 = sphi %s2902_s16, %s4131_s16   ;;  %s2851_s15 = sphi %s2900_s15, %s4130_s15  }
   0x5   : > { %s29_s23 = sadd.s32 1, %s2867_s19  ;;  %s140_s24 = sadd.s32 1, %s2859_s17 }
   0x6   : > { %p31_p0 = scmp.ge.s32.totalorder %s29_s23, 2  ;;  %p150_p1 = scmp.ne.s32.totalorder %s2859_s17, %s2855_s16 }
   0x7   : > { %p151_p2 = scmp.eq.s32.totalorder %s2494_s21, 1  ;;  %p156_p3 = scmp.ne.s32.totalorder %s2855_s16, %s2851_s15 }
   0x8   : > { %s4136_s23 = smov (%p31_p0, %s29_s23), 0  ;;  %p157_p5 = scmp.eq.s32.totalorder %s2495_s22, 1 }
   0x9   : > { %p2940_p4 = por %p151_p2, %p150_p1  ;;  %s135_s26 = ssub.s32 %s2867_s19, %s4136_s23 }
   0xa   : > { %p2498_p6 = scmp.ge.s32.totalorder %s2871_s20, 1  ;;  %p138_p7 = scmp.eq.s32.totalorder %s135_s26, 0 }
   0xb   : > { %p2947_p8 = por %p157_p5, %p156_p3  ;;  %p223_p9 = scmp.lt.s32.totalorder %s2871_s20, 3 }
   0xc   : > { %s2953_s28 = scalar_select %p138_p7, %s2859_s17, %s140_s24  }
   0xd   : > { %p224_p10 = pnand %p2498_p6, %p223_p9 }
   0xf   : > { %227 = sbr.rel (%p224_p10) target bundleno = 762 (0x2fa), region = 36 }
  0x14   : > { %v1191_v0 = vld [vmem:[%s4096_s2 + $0x78] sm:$0xff]  ;;  %v1190_v1 = vld [vmem:[%s4096_s2 + $0x70] sm:$0xff]  ;;  %p277_p11 = scmp.lt.s32.totalorder %s2863_s18, 1  ;;  %v1189_v2 = vld [vmem:[%s4096_s2 + $0x68] sm:$0xff]  ;;  %s2813_s8 = scalar_lea.hbm %s4098_s4, 512 }
  0x15   : > { %2684 = vmatpush.msra.mxu1 %v1191_v0  ;;  %2685 = vmatpush.msra.mxu2 %v1191_v0  ;;  %v1188_v3 = vld [vmem:[%s4096_s2 + $0x60] sm:$0xff]  ;;  %v1187_v4 = vld [vmem:[%s4096_s2 + $0x58] sm:$0xff]  ;;  %v1186_v5 = vld [vmem:[%s4096_s2 + $0x50] sm:$0xff] }
  0x16   : > { %2686 = vmatpush.msra.mxu3 %v1191_v0  ;;  %1324 = vmatpush.msra.mxu0 %v1191_v0  ;;  %s2966_s9 = scalar_select %p277_p11, %s2863_s18, 1  ;;  %v1185_v6 = vld [vmem:[%s4096_s2 + $0x48] sm:$0xff]  ;;  %v1184_v7 = vld [vmem:[%s4096_s2 + $0x40] sm:$0xff]  ;;  %v1183_v8 = vld [vmem:[%s4096_s2 + $0x38] sm:$0xff] }
  0x17   : > { %2687 = vmatpush.msra.mxu1 %v1190_v1  ;;  %2688 = vmatpush.msra.mxu2 %v1190_v1  ;;  %v1182_v9 = vld [vmem:[%s4096_s2 + $0x30] sm:$0xff]  ;;  %v1181_v10 = vld [vmem:[%s4096_s2 + $0x28] sm:$0xff]  ;;  %v1180_v11 = vld [vmem:[%s4096_s2 + $0x20] sm:$0xff] }
  0x18   : > { %2689 = vmatpush.msra.mxu3 %v1190_v1  ;;  %1325 = vmatpush.msra.mxu0 %v1190_v1  ;;  %v1179_v12 = vld [vmem:[%s4096_s2 + $0x18] sm:$0xff]  ;;  %s2732_s21 = smul.u32 576, %s2966_s9  ;;  %v1178_v13 = vld [vmem:[%s4096_s2 + $0x10] sm:$0xff]  ;;  %v1177_v14 = vld [vmem:[%s4096_s2 + $0x8] sm:$0xff]  ;;  %s268_s9 = sand.u32 1, %s2855_s16  }
  0x19   : > { %2690 = vmatpush.msra.mxu1 %v1189_v2  ;;  %2691 = vmatpush.msra.mxu2 %v1189_v2  ;;  %v1176_v15 = vld [vmem:[%s4096_s2] sm:$0xff]  ;;  %v1223_v18 = vld [vmem:[%s4096_s2 + $0x178] sm:$0xff]  ;;  %v1222_v22 = vld [vmem:[%s4096_s2 + $0x170] sm:$0xff] }
  0x1a   : > { %2692 = vmatpush.msra.mxu3 %v1189_v2  ;;  %1326 = vmatpush.msra.mxu0 %v1189_v2  ;;  %s3010_s6 = scalar_lea.vmem %s4094_s0, %s2732_s21  ;;  %v1207_v20 = vld [vmem:[%s4096_s2 + $0xf8] sm:$0xff]  ;;  %v1206_v23 = vld [vmem:[%s4096_s2 + $0xf0] sm:$0xff]  ;;  %v1221_v25 = vld [vmem:[%s4096_s2 + $0x168] sm:$0xff]  ;;  %s2682_s7 = sadd.s32 384, %s2732_s21 }
  0x1b   : > { %2693 = vmatpush.msra.mxu1 %v1188_v3  ;;  %2694 = vmatpush.msra.mxu2 %v1188_v3  ;;  %v3016_v16 = vld [vmem:[%s3010_s6 + $0x60] sm:$0xff]  ;;  %v1239_v21 = vld [vmem:[%s4096_s2 + $0x1f8] sm:$0xff]  ;;  %v1238_v24 = vld [vmem:[%s4096_s2 + $0x1f0] sm:$0xff]  ;;  %s3792_s11 = scalar_lea.vmem %s4095_s1, %s2682_s7  ;;  %s2499_s21 = sshll.u32 %s268_s9, 8 }
  0x1c   : > { %2695 = vmatpush.msra.mxu3 %v1188_v3  ;;  %1327 = vmatpush.msra.mxu0 %v1188_v3  ;;  %v3019_v17 = vld [vmem:[%s3010_s6 + $0xc0] sm:$0xff]  ;;  %v1205_v27 = vld [vmem:[%s4096_s2 + $0xe8] sm:$0xff]  ;;  %v1255_v29 = vld [vmem:[%s4096_s2 + $0x278] sm:$0xff]  ;;  %s3939_s12 = scalar_lea.vmem [#allocation3], %s2499_s21 }
  0x1d   : > { %2696 = vmatpush.msra.mxu1 %v1187_v4  ;;  %2697 = vmatpush.msra.mxu2 %v1187_v4  ;;  %v332_v19 = vld [vmem:[%s3010_s6 + $0x120] sm:$0xff]  ;;  %v1237_v28 = vld [vmem:[%s4096_s2 + $0x1e8] sm:$0xff]  ;;  %v1254_v35 = vld [vmem:[%s4096_s2 + $0x270] sm:$0xff]  ;;  %s2388_s24 = sshll.u32 %s3939_s12, 4  ;;  %s2389_s24 = int_to_ptr.vmem [resolvable:$true] %s2388_s24 }
  0x1e   : > { %2698 = vmatpush.msra.mxu3 %v1187_v4  ;;  %1328 = vmatpush.msra.mxu0 %v1187_v4  ;;  %v308_v26 = vld [vmem:[%s3010_s6] sm:$0xff]  ;;  %v3056_v30 = vld [vmem:[%s3010_s6 + $0x68] sm:$0xff]  ;;  %v1219_v37 = vld [vmem:[%s4096_s2 + $0x158] sm:$0xff] }
  0x1f   : > { %2699 = vmatpush.msra.mxu1 %v1186_v5  ;;  %2700 = vmatpush.msra.mxu2 %v1186_v5  ;;  %v3059_v31 = vld [vmem:[%s3010_s6 + $0xc8] sm:$0xff]  ;;  %v1220_v32 = vld [vmem:[%s4096_s2 + $0x160] sm:$0xff]  ;;  %v1235_v38 = vld [vmem:[%s4096_s2 + $0x1d8] sm:$0xff] }
  0x20   : > { %2701 = vmatpush.msra.mxu3 %v1186_v5  ;;  %1329 = vmatpush.msra.mxu0 %v1186_v5  ;;  %v1236_v33 = vld [vmem:[%s4096_s2 + $0x1e0] sm:$0xff]  ;;  %v333_v34 = vld [vmem:[%s3010_s6 + $0x128] sm:$0xff]  ;;  %v1203_v40 = vld [vmem:[%s4096_s2 + $0xd8] sm:$0xff] }
  0x21   : > { %2702 = vmatpush.msra.mxu1 %v1185_v6  ;;  %2703 = vmatpush.msra.mxu2 %v1185_v6  ;;  %v1204_v36 = vld [vmem:[%s4096_s2 + $0xe0] sm:$0xff]  ;;  %v1253_v39 = vld [vmem:[%s4096_s2 + $0x268] sm:$0xff]  ;;  %v1218_v41 = vld [vmem:[%s4096_s2 + $0x150] sm:$0xff] }
  0x22   : > { %2704 = vmatpush.msra.mxu3 %v1185_v6  ;;  %1330 = vmatpush.msra.mxu0 %v1185_v6  ;;  %v309_v42 = vld [vmem:[%s3010_s6 + $0x8] sm:$0xff]  ;;  %v1234_v43 = vld [vmem:[%s4096_s2 + $0x1d0] sm:$0xff]  ;;  %v1252_v44 = vld [vmem:[%s4096_s2 + $0x260] sm:$0xff] }
  0x23   : > { %2705 = vmatpush.msra.mxu1 %v1184_v7  ;;  %2706 = vmatpush.msra.mxu2 %v1184_v7  ;;  %v1202_v45 = vld [vmem:[%s4096_s2 + $0xd0] sm:$0xff]  ;;  %v3102_v46 = vld [vmem:[%s3010_s6 + $0x78] sm:$0xff]  ;;  %v1217_v48 = vld [vmem:[%s4096_s2 + $0x148] sm:$0xff] }
  0x24   : > { %2707 = vmatpush.msra.mxu3 %v1184_v7  ;;  %1331 = vmatpush.msra.mxu0 %v1184_v7  ;;  %v3105_v47 = vld [vmem:[%s3010_s6 + $0xd8] sm:$0xff]  ;;  %v1233_v49 = vld [vmem:[%s4096_s2 + $0x1c8] sm:$0xff]  ;;  %v1216_v53 = vld [vmem:[%s4096_s2 + $0x140] sm:$0xff] }
  0x25   : > { %2708 = vmatpush.msra.mxu1 %v1183_v8  ;;  %2709 = vmatpush.msra.mxu2 %v1183_v8  ;;  %v334_v50 = vld [vmem:[%s3010_s6 + $0x138] sm:$0xff]  ;;  %v1201_v52 = vld [vmem:[%s4096_s2 + $0xc8] sm:$0xff]  ;;  %v1232_v54 = vld [vmem:[%s4096_s2 + $0x1c0] sm:$0xff] }
  0x26   : > { %2710 = vmatpush.msra.mxu3 %v1183_v8  ;;  %1332 = vmatpush.msra.mxu0 %v1183_v8  ;;  %v1251_v51 = vld [vmem:[%s4096_s2 + $0x258] sm:$0xff]  ;;  %v1250_v55 = vld [vmem:[%s4096_s2 + $0x250] sm:$0xff]  ;;  %v1200_v56 = vld [vmem:[%s4096_s2 + $0xc0] sm:$0xff] }
  0x27   : > { %2711 = vmatpush.msra.mxu1 %v1182_v9  ;;  %2712 = vmatpush.msra.mxu2 %v1182_v9  ;;  %v1215_v57 = vld [vmem:[%s4096_s2 + $0x138] sm:$0xff]  ;;  %v1249_v60 = vld [vmem:[%s4096_s2 + $0x248] sm:$0xff]  ;;  %v3150_v62 = vld [vmem:[%s3010_s6 + $0x80] sm:$0xff] }
  0x28   : > { %2713 = vmatpush.msra.mxu3 %v1182_v9  ;;  %1333 = vmatpush.msra.mxu0 %v1182_v9  ;;  %v3138_v58 = vld [vmem:[%s3010_s6 + $0x18] sm:$0xff]  ;;  %v3153_v63 = vld [vmem:[%s3010_s6 + $0xe0] sm:$0xff]  ;;  %v1214_v0 = vld [vmem:[%s4096_s2 + $0x130] sm:$0xff] }
  0x29   : > { %2714 = vmatpush.msra.mxu1 %v1181_v10  ;;  %2715 = vmatpush.msra.mxu2 %v1181_v10  ;;  %v1231_v59 = vld [vmem:[%s4096_s2 + $0x1b8] sm:$0xff]  ;;  %v1230_v1 = vld [vmem:[%s4096_s2 + $0x1b0] sm:$0xff]  ;;  %v335_v2 = vld [vmem:[%s3010_s6 + $0x140] sm:$0xff] }
  0x2a   : > { %2716 = vmatpush.msra.mxu3 %v1181_v10  ;;  %1334 = vmatpush.msra.mxu0 %v1181_v10  ;;  %v1199_v61 = vld [vmem:[%s4096_s2 + $0xb8] sm:$0xff]  ;;  %v1248_v3 = vld [vmem:[%s4096_s2 + $0x240] sm:$0xff]  ;;  %v1198_v4 = vld [vmem:[%s4096_s2 + $0xb0] sm:$0xff] }
  0x2b   : > { %2717 = vmatpush.msra.mxu1 %v1180_v11  ;;  %2718 = vmatpush.msra.mxu2 %v1180_v11  ;;  %v1213_v5 = vld [vmem:[%s4096_s2 + $0x128] sm:$0xff]  ;;  %v1247_v7 = vld [vmem:[%s4096_s2 + $0x238] sm:$0xff]  ;;  %v1212_v9 = vld [vmem:[%s4096_s2 + $0x120] sm:$0xff] }
  0x2c   : > { %2719 = vmatpush.msra.mxu3 %v1180_v11  ;;  %1335 = vmatpush.msra.mxu0 %v1180_v11  ;;  %v1229_v6 = vld [vmem:[%s4096_s2 + $0x1a8] sm:$0xff]  ;;  %v3187_v10 = vld [vmem:[%s3010_s6 + $0x20] sm:$0xff] }
  0x2d   : > { %2720 = vmatpush.msra.mxu1 %v1179_v12  ;;  %2721 = vmatpush.msra.mxu2 %v1179_v12  ;;  %v1197_v8 = vld [vmem:[%s4096_s2 + $0xa8] sm:$0xff]  ;;  %v1228_v11 = vld [vmem:[%s4096_s2 + $0x1a0] sm:$0xff] }
  0x2e   : > { %2722 = vmatpush.msra.mxu3 %v1179_v12  ;;  %1336 = vmatpush.msra.mxu0 %v1179_v12  ;;  %v1246_v12 = vld [vmem:[%s4096_s2 + $0x230] sm:$0xff] }
  0x2f   : > { %2723 = vmatpush.msra.mxu1 %v1178_v13  ;;  %2724 = vmatpush.msra.mxu2 %v1178_v13 }
  0x30   : > { %2725 = vmatpush.msra.mxu3 %v1178_v13  ;;  %1337 = vmatpush.msra.mxu0 %v1178_v13  ;;  %v1196_v13 = vld [vmem:[%s4096_s2 + $0xa0] sm:$0xff] }
  0x31   : > { %2726 = vmatpush.msra.mxu1 %v1177_v14  ;;  %2727 = vmatpush.msra.mxu2 %v1177_v14 }
  0x32   : > { %2728 = vmatpush.msra.mxu3 %v1177_v14  ;;  %1338 = vmatpush.msra.mxu0 %v1177_v14  ;;  %v3199_v14 = vld [vmem:[%s3010_s6 + $0x90] sm:$0xff] }
  0x33   : > { %2729 = vmatpush.msra.mxu1 %v1176_v15  ;;  %2730 = vmatpush.msra.mxu2 %v1176_v15 }
  0x34   : > { %1364 = vmatmul.f32.vlgmr.msra.gmra.mxu1 %v3016_v16  ;;  %1388 = vmatmul.f32.vlgmr.msra.gmra.mxu2 %v3019_v17 }
  0x35   : > { %1550 = vmatpush.msrb.mxu2 %v1223_v18  ;;  %2731 = vmatpush.msra.mxu3 %v1176_v15  ;;  %v1211_v18 = vld [vmem:[%s4096_s2 + $0x118] sm:$0xff] }
  0x36   : > { %1412 = vmatmul.f32.vlgmr.msra.gmra.mxu3 %v332_v19  ;;  %1437 = vmatpush.msrb.mxu1 %v1207_v20  ;;  %v1227_v19 = vld [vmem:[%s4096_s2 + $0x198] sm:$0xff]  ;;  %v336_v20 = vld [vmem:[%s3010_s6 + $0x150] sm:$0xff] }
  0x37   : > { %1663 = vmatpush.msrb.mxu3 %v1239_v21  ;;  %1551 = vmatpush.msrb.mxu2 %v1222_v22  ;;  %v1245_v21 = vld [vmem:[%s4096_s2 + $0x228] sm:$0xff]  ;;  %v1195_v22 = vld [vmem:[%s4096_s2 + $0x98] sm:$0xff] }
  0x38   : > { %1438 = vmatpush.msrb.mxu1 %v1206_v23  ;;  %1339 = vmatpush.msra.mxu0 %v1176_v15  ;;  %v3202_v15 = vld [vmem:[%s3010_s6 + $0xf0] sm:$0xff] }
  0x39   : > { %1664 = vmatpush.msrb.mxu3 %v1238_v24  ;;  %1552 = vmatpush.msrb.mxu2 %v1221_v25  ;;  %v1210_v23 = vld [vmem:[%s4096_s2 + $0x110] sm:$0xff]  ;;  %v1244_v25 = vld [vmem:[%s4096_s2 + $0x220] sm:$0xff] }
  0x3a   : > { %1340 = vmatmul.f32.vlgmr.msra.gmra.mxu0 %v308_v26  ;;  %1439 = vmatpush.msrb.mxu1 %v1205_v27  ;;  %v1226_v24 = vld [vmem:[%s4096_s2 + $0x190] sm:$0xff]  ;;  %v1209_v27 = vld [vmem:[%s4096_s2 + $0x108] sm:$0xff] }
  0x3b   : > { %1665 = vmatpush.msrb.mxu3 %v1237_v28  ;;  %1776 = vmatpush.msrb.mxu0 %v1255_v29  ;;  %v1194_v26 = vld [vmem:[%s4096_s2 + $0x90] sm:$0xff]  ;;  %v1225_v29 = vld [vmem:[%s4096_s2 + $0x188] sm:$0xff] }
  0x3c   : > { %1367 = vmatmul.f32.gmra.mxu1 %v3056_v30  ;;  %1391 = vmatmul.f32.gmra.mxu2 %v3059_v31  ;;  %v3236_v28 = vld [vmem:[%s3010_s6 + $0x30] sm:$0xff] }
  0x3d   : > { %1553 = vmatpush.msrb.mxu2 %v1220_v32  ;;  %1666 = vmatpush.msrb.mxu3 %v1236_v33  ;;  %v1243_v32 = vld [vmem:[%s4096_s2 + $0x218] sm:$0xff]  ;;  %v1193_v33 = vld [vmem:[%s4096_s2 + $0x88] sm:$0xff] }
  0x3e   : > { %1415 = vmatmul.f32.gmra.mxu3 %v333_v34  ;;  %1777 = vmatpush.msrb.mxu0 %v1254_v35  ;;  %v3248_v34 = vld [vmem:[%s3010_s6 + $0x98] sm:$0xff] }
  0x3f   : > { %1440 = vmatpush.msrb.mxu1 %v1204_v36  ;;  %1554 = vmatpush.msrb.mxu2 %v1219_v37  ;;  %v3251_v35 = vld [vmem:[%s3010_s6 + $0xf8] sm:$0xff]  ;;  %v1208_v36 = vld [vmem:[%s4096_s2 + $0x100] sm:$0xff] }
  0x40   : > { %1667 = vmatpush.msrb.mxu3 %v1235_v38  ;;  %1778 = vmatpush.msrb.mxu0 %v1253_v39  ;;  %v1224_v37 = vld [vmem:[%s4096_s2 + $0x180] sm:$0xff]  ;;  %v337_v38 = vld [vmem:[%s3010_s6 + $0x158] sm:$0xff]  ;;  %v1242_v39 = vld [vmem:[%s4096_s2 + $0x210] sm:$0xff] }
  0x41   : > { %1441 = vmatpush.msrb.mxu1 %v1203_v40  ;;  %1555 = vmatpush.msrb.mxu2 %v1218_v41  ;;  %v1192_v40 = vld [vmem:[%s4096_s2 + $0x80] sm:$0xff]  ;;  %v1287_v41 = vld [vmem:[%s4096_s2 + $0x378] sm:$0xff] }
  0x42   : > { %1343 = vmatmul.f32.gmra.mxu0 %v309_v42  ;;  %1668 = vmatpush.msrb.mxu3 %v1234_v43  ;;  %v1241_v42 = vld [vmem:[%s4096_s2 + $0x208] sm:$0xff]  ;;  %v1303_v43 = vld [vmem:[%s4096_s2 + $0x3f8] sm:$0xff] }
  0x43   : > { %1779 = vmatpush.msrb.mxu0 %v1252_v44  ;;  %1442 = vmatpush.msrb.mxu1 %v1202_v45  ;;  %v1271_v44 = vld [vmem:[%s4096_s2 + $0x2f8] sm:$0xff] }
  0x44   : > { %1370 = vmatmul.f32.gmra.mxu1 %v3102_v46  ;;  %1394 = vmatmul.f32.gmra.mxu2 %v3105_v47  ;;  %v3282_v45 = vld [vmem:[%s3010_s6 + $0x38] sm:$0xff] }
  0x45   : > { %1556 = vmatpush.msrb.mxu2 %v1217_v48  ;;  %1669 = vmatpush.msrb.mxu3 %v1233_v49  ;;  %v1240_v48 = vld [vmem:[%s4096_s2 + $0x200] sm:$0xff]  ;;  %v3288_v49 = vld [vmem:[%s3010_s6 + $0xa8] sm:$0xff] }
  0x46   : > { %1418 = vmatmul.f32.gmra.mxu3 %v334_v50  ;;  %1780 = vmatpush.msrb.mxu0 %v1251_v51  ;;  %v3291_v50 = vld [vmem:[%s3010_s6 + $0x108] sm:$0xff]  ;;  %v1319_v51 = vld [vmem:[%s4096_s2 + $0x478] sm:$0xff] }
  0x47   : > { %1443 = vmatpush.msrb.mxu1 %v1201_v52  ;;  %1557 = vmatpush.msrb.mxu2 %v1216_v53  ;;  %v338_v52 = vld [vmem:[%s3010_s6 + $0x168] sm:$0xff]  ;;  %v1286_v53 = vld [vmem:[%s4096_s2 + $0x370] sm:$0xff] }
  0x48   : > { %1670 = vmatpush.msrb.mxu3 %v1232_v54  ;;  %1781 = vmatpush.msrb.mxu0 %v1250_v55  ;;  %v1302_v54 = vld [vmem:[%s4096_s2 + $0x3f0] sm:$0xff] }
  0x49   : > { %1444 = vmatpush.msrb.mxu1 %v1200_v56  ;;  %1558 = vmatpush.msrb.mxu2 %v1215_v57  ;;  %v1270_v55 = vld [vmem:[%s4096_s2 + $0x2f0] sm:$0xff]  ;;  %v314_v56 = vld [vmem:[%s3010_s6 + $0x48] sm:$0xff] }
  0x4a   : > { %1346 = vmatmul.f32.gmra.mxu0 %v3138_v58  ;;  %1671 = vmatpush.msrb.mxu3 %v1231_v59  ;;  %v3311_v57 = vld [vmem:[%s3010_s6 + $0xb0] sm:$0xff] }
  0x4b   : > { %1782 = vmatpush.msrb.mxu0 %v1249_v60  ;;  %1445 = vmatpush.msrb.mxu1 %v1199_v61  ;;  %v3314_v59 = vld [vmem:[%s3010_s6 + $0x110] sm:$0xff] }
  0x4c   : > { %1373 = vmatmul.f32.gmra.mxu1 %v3150_v62  ;;  %1397 = vmatmul.f32.gmra.mxu2 %v3153_v63  ;;  %v339_v60 = vld [vmem:[%s3010_s6 + $0x170] sm:$0xff] }
  0x4d   : > { %1559 = vmatpush.msrb.mxu2 %v1214_v0  ;;  %1672 = vmatpush.msrb.mxu3 %v1230_v1  ;;  %v1318_v61 = vld [vmem:[%s4096_s2 + $0x470] sm:$0xff]  ;;  %v372_v1 = vld [vmem:[%s3010_s6 + $0x1] sm:$0xff] }
  0x4e   : > { %1421 = vmatmul.f32.gmra.mxu3 %v335_v2  ;;  %1783 = vmatpush.msrb.mxu0 %v1248_v3  ;;  %v315_v0 = vld [vmem:[%s3010_s6 + $0x50] sm:$0xff]  ;;  %v436_v2 = vld [vmem:[%s3010_s6 + $0x2] sm:$0xff] }
  0x4f   : > { %1446 = vmatpush.msrb.mxu1 %v1198_v4  ;;  %1560 = vmatpush.msrb.mxu2 %v1213_v5  ;;  %v1285_v3 = vld [vmem:[%s4096_s2 + $0x368] sm:$0xff] }
  0x50   : > { %1673 = vmatpush.msrb.mxu3 %v1229_v6  ;;  %1784 = vmatpush.msrb.mxu0 %v1247_v7  ;;  %v1301_v4 = vld [vmem:[%s4096_s2 + $0x3e8] sm:$0xff]  ;;  %v2532_v6 = vld [vmem:[%s3010_s6 + $0x19] sm:$0xff] }
  0x51   : > { %1447 = vmatpush.msrb.mxu1 %v1197_v8  ;;  %1561 = vmatpush.msrb.mxu2 %v1212_v9  ;;  %v1269_v5 = vld [vmem:[%s4096_s2 + $0x2e8] sm:$0xff] }
  0x52   : > { %1349 = vmatmul.f32.gmra.mxu0 %v3187_v10  ;;  %1674 = vmatpush.msrb.mxu3 %v1228_v11  ;;  %v373_v7 = vld [vmem:[%s3010_s6 + $0x9] sm:$0xff]  ;;  %v2533_v9 = vld [vmem:[%s3010_s6 + $0x21] sm:$0xff] }
  0x53   : > { %1785 = vmatpush.msrb.mxu0 %v1246_v12  ;;  %1448 = vmatpush.msrb.mxu1 %v1196_v13  ;;  %v437_v8 = vld [vmem:[%s3010_s6 + $0xa] sm:$0xff]  ;;  %v438_v11 = vld [vmem:[%s3010_s6 + $0x1a] sm:$0xff] }
  0x54   : > { %1376 = vmatmul.f32.gmra.mxu1 %v3199_v14  ;;  %1400 = vmatmul.f32.gmra.mxu2 %v3202_v15  ;;  %v1284_v12 = vld [vmem:[%s4096_s2 + $0x360] sm:$0xff] }
  0x55   : > { %1562 = vmatpush.msrb.mxu2 %v1211_v18  ;;  %1675 = vmatpush.msrb.mxu3 %v1227_v19  ;;  %v1268_v13 = vld [vmem:[%s4096_s2 + $0x2e0] sm:$0xff]  ;;  %v2534_v18 = vld [vmem:[%s3010_s6 + $0x31] sm:$0xff] }
  0x56   : > { %1424 = vmatmul.f32.gmra.mxu3 %v336_v20  ;;  %1786 = vmatpush.msrb.mxu0 %v1245_v21  ;;  %v439_v19 = vld [vmem:[%s3010_s6 + $0x22] sm:$0xff]  ;;  %v2535_v21 = vld [vmem:[%s3010_s6 + $0x39] sm:$0xff] }
  0x57   : > { %1449 = vmatpush.msrb.mxu1 %v1195_v22  ;;  %1563 = vmatpush.msrb.mxu2 %v1210_v23  ;;  %v1316_v20 = vld [vmem:[%s4096_s2 + $0x460] sm:$0xff]  ;;  %v440_v22 = vld [vmem:[%s3010_s6 + $0x32] sm:$0xff] }
  0x58   : > { %1676 = vmatpush.msrb.mxu3 %v1226_v24  ;;  %1787 = vmatpush.msrb.mxu0 %v1244_v25  ;;  %v1283_v23 = vld [vmem:[%s4096_s2 + $0x358] sm:$0xff]  ;;  %v2536_v25 = vld [vmem:[%s3010_s6 + $0x49] sm:$0xff] }
  0x59   : > { %1450 = vmatpush.msrb.mxu1 %v1194_v26  ;;  %1564 = vmatpush.msrb.mxu2 %v1209_v27  ;;  %v1299_v24 = vld [vmem:[%s4096_s2 + $0x3d8] sm:$0xff] }
  0x5a   : > { %1352 = vmatmul.f32.gmra.mxu0 %v3236_v28  ;;  %1677 = vmatpush.msrb.mxu3 %v1225_v29  ;;  %v1267_v26 = vld [vmem:[%s4096_s2 + $0x2d8] sm:$0xff] }
  0x5b   : > { %1788 = vmatpush.msrb.mxu0 %v1243_v32  ;;  %1451 = vmatpush.msrb.mxu1 %v1193_v33  ;;  %v441_v27 = vld [vmem:[%s3010_s6 + $0x3a] sm:$0xff]  ;;  %v2537_v29 = vld [vmem:[%s3010_s6 + $0x51] sm:$0xff] }
  0x5c   : > { %1379 = vmatmul.f32.gmra.mxu1 %v3248_v34  ;;  %1403 = vmatmul.f32.gmra.mxu2 %v3251_v35  ;;  %v442_v32 = vld [vmem:[%s3010_s6 + $0x4a] sm:$0xff] }
  0x5d   : > { %1565 = vmatpush.msrb.mxu2 %v1208_v36  ;;  %1678 = vmatpush.msrb.mxu3 %v1224_v37  ;;  %v1282_v33 = vld [vmem:[%s4096_s2 + $0x350] sm:$0xff]  ;;  %v2538_v37 = vld [vmem:[%s3010_s6 + $0x61] sm:$0xff] }
  0x5e   : > { %1427 = vmatmul.f32.gmra.mxu3 %v337_v38  ;;  %1789 = vmatpush.msrb.mxu0 %v1242_v39  ;;  %v1298_v36 = vld [vmem:[%s4096_s2 + $0x3d0] sm:$0xff] }
  0x5f   : > { %1452 = vmatpush.msrb.mxu1 %v1192_v40  ;;  %2002 = vmatpush.msra.mxu2 %v1287_v41  ;;  %v1266_v38 = vld [vmem:[%s4096_s2 + $0x2d0] sm:$0xff] }
  0x60   : > { %1790 = vmatpush.msrb.mxu0 %v1241_v42  ;;  %2115 = vmatpush.msra.mxu3 %v1303_v43  ;;  %v443_v39 = vld [vmem:[%s3010_s6 + $0x52] sm:$0xff]  ;;  %v2539_v40 = vld [vmem:[%s3010_s6 + $0x69] sm:$0xff] }
  0x61   : > { %1889 = vmatpush.msra.mxu1 %v1271_v44  ;;  %2003 = vmatpush.msra.mxu2 %v1286_v53  ;;  %v444_v42 = vld [vmem:[%s3010_s6 + $0x62] sm:$0xff] }
  0x62   : > { %1355 = vmatmul.f32.gmra.mxu0 %v3282_v45  ;;  %2116 = vmatpush.msra.mxu3 %v1302_v54  ;;  %v1281_v43 = vld [vmem:[%s4096_s2 + $0x348] sm:$0xff] }
  0x63   : > { %1791 = vmatpush.msrb.mxu0 %v1240_v48  ;;  %1890 = vmatpush.msra.mxu1 %v1270_v55  ;;  %v1297_v44 = vld [vmem:[%s4096_s2 + $0x3c8] sm:$0xff] }
  0x64   : > { %1382 = vmatmul.f32.gmra.mxu1 %v3288_v49  ;;  %1406 = vmatmul.f32.gmra.mxu2 %v3291_v50  ;;  %v1265_v53 = vld [vmem:[%s4096_s2 + $0x2c8] sm:$0xff] }
  0x65   : > { %2228 = vmatpush.msra.mxu0 %v1319_v51  ;;  %2004 = vmatpush.msra.mxu2 %v1285_v3  ;;  %v2540_v51 = vld [vmem:[%s3010_s6 + $0x79] sm:$0xff]  ;;  %v445_v55 = vld [vmem:[%s3010_s6 + $0x6a] sm:$0xff] }
  0x66   : > { %1430 = vmatmul.f32.gmra.mxu3 %v338_v52  ;;  %1891 = vmatpush.msra.mxu1 %v1269_v5  ;;  %v446_v5 = vld [vmem:[%s3010_s6 + $0x7a] sm:$0xff] }
  0x67   : > { %2229 = vmatpush.msra.mxu0 %v1318_v61  ;;  %2117 = vmatpush.msra.mxu3 %v1301_v4 }
  0x68   : > { %2005 = vmatpush.msra.mxu2 %v1284_v12  ;;  %1892 = vmatpush.msra.mxu1 %v1268_v13  ;;  %v1264_v12 = vld [vmem:[%s4096_s2 + $0x2c0] sm:$0xff] }
  0x69   : > { %v447_v13 = vld [vmem:[%s3010_s6 + $0x82] sm:$0xff] }
  0x6a   : > { %1358 = vmatmul.f32.gmra.mxu0 %v314_v56  ;;  %2006 = vmatpush.msra.mxu2 %v1283_v23 }
  0x6b   : > { %1893 = vmatpush.msra.mxu1 %v1267_v26  ;;  %v448_v26 = vld [vmem:[%s3010_s6 + $0x92] sm:$0xff] }
  0x6c   : > { %1385 = vmatmul.f32.gmra.mxu1 %v3311_v57  ;;  %1409 = vmatmul.f32.gmra.mxu2 %v3314_v59 }
  0x6d   : > { %2007 = vmatpush.msra.mxu2 %v1282_v33  ;;  %1894 = vmatpush.msra.mxu1 %v1266_v38  ;;  %v2544_v33 = vld [vmem:[%s3010_s6 + $0xa9] sm:$0xff] }
  0x6e   : > { %1433 = vmatmul.f32.gmra.mxu3 %v339_v60  ;;  %v1313_v60 = vld [vmem:[%s4096_s2 + $0x448] sm:$0xff] }
  0x6f   : > { %2008 = vmatpush.msra.mxu2 %v1281_v43  ;;  %1895 = vmatpush.msra.mxu1 %v1265_v53 }
  0x71   : > { %1896 = vmatpush.msra.mxu1 %v1264_v12  ;;  %v1310_v12 = vld [vmem:[%s4096_s2 + $0x430] sm:$0xff] }
  0x72   : > { %1361 = vmatmul.f32.gmra.mxu0 %v315_v0 }
  0x74   : > { %1453 = vmatmul.f32.vlgmr.msrb.gmra.mxu1 %v372_v1  ;;  %1566 = vmatmul.f32.vlgmr.msrb.gmra.mxu2 %v436_v2  ;;  %v2541_v1 = vld [vmem:[%s3010_s6 + $0x81] sm:$0xff] }
  0x76   : > { %1679 = vmatmul.f32.vlgmr.msrb.gmra.mxu3 %v3138_v58  ;;  %v1317_v58 = vld [vmem:[%s4096_s2 + $0x468] sm:$0xff] }
  0x77   : > { %2230 = vmatpush.msra.mxu0 %v1317_v58 }
  0x79   : > { %2231 = vmatpush.msra.mxu0 %v1316_v20 }
  0x7a   : > { %1792 = vmatmul.f32.vlgmr.msrb.gmra.mxu0 %v2532_v6 }
  0x7c   : > { %1456 = vmatmul.f32.gmra.mxu1 %v373_v7  ;;  %1569 = vmatmul.f32.gmra.mxu2 %v437_v8  ;;  %v1296_v7 = vld [vmem:[%s4096_s2 + $0x3c0] sm:$0xff] }
  0x7e   : > { %1682 = vmatmul.f32.gmra.mxu3 %v3187_v10  ;;  %v1300_v10 = vld [vmem:[%s4096_s2 + $0x3e0] sm:$0xff] }
  0x7f   : > { %2118 = vmatpush.msra.mxu3 %v1300_v10 }
  0x81   : > { %2119 = vmatpush.msra.mxu3 %v1299_v24 }
  0x82   : > { %1795 = vmatmul.f32.gmra.mxu0 %v2533_v9 }
  0x83   : > { %2120 = vmatpush.msra.mxu3 %v1298_v36 }
  0x84   : > { %1459 = vmatmul.f32.gmra.mxu1 %v2532_v6  ;;  %1572 = vmatmul.f32.gmra.mxu2 %v438_v11 }
  0x85   : > { %2121 = vmatpush.msra.mxu3 %v1297_v44  ;;  %v2545_v44 = vld [vmem:[%s3010_s6 + $0xb1] sm:$0xff] }
  0x86   : > { %1685 = vmatmul.f32.gmra.mxu3 %v3236_v28  ;;  %v1315_v28 = vld [vmem:[%s4096_s2 + $0x458] sm:$0xff] }
  0x87   : > { %2232 = vmatpush.msra.mxu0 %v1315_v28  ;;  %2122 = vmatpush.msra.mxu3 %v1296_v7  ;;  %v1295_v28 = vld [vmem:[%s4096_s2 + $0x3b8] sm:$0xff] }
  0x89   : > { %2123 = vmatpush.msra.mxu3 %v1295_v28  ;;  %v1277_v28 = vld [vmem:[%s4096_s2 + $0x328] sm:$0xff] }
  0x8a   : > { %1798 = vmatmul.f32.gmra.mxu0 %v2534_v18 }
  0x8c   : > { %1462 = vmatmul.f32.gmra.mxu1 %v2533_v9  ;;  %1575 = vmatmul.f32.gmra.mxu2 %v439_v19  ;;  %v2542_v9 = vld [vmem:[%s3010_s6 + $0x91] sm:$0xff]  ;;  %v1312_v19 = vld [vmem:[%s4096_s2 + $0x440] sm:$0xff] }
  0x8e   : > { %1688 = vmatmul.f32.gmra.mxu3 %v3282_v45 }
  0x92   : > { %1801 = vmatmul.f32.gmra.mxu0 %v2535_v21 }
  0x94   : > { %1465 = vmatmul.f32.gmra.mxu1 %v2534_v18  ;;  %1578 = vmatmul.f32.gmra.mxu2 %v440_v22  ;;  %v2543_v22 = vld [vmem:[%s3010_s6 + $0x99] sm:$0xff] }
  0x96   : > { %1691 = vmatmul.f32.gmra.mxu3 %v314_v56 }
  0x9a   : > { %1804 = vmatmul.f32.gmra.mxu0 %v2536_v25 }
  0x9c   : > { %1468 = vmatmul.f32.gmra.mxu1 %v2535_v21  ;;  %1581 = vmatmul.f32.gmra.mxu2 %v441_v27 }
  0x9e   : > { %1694 = vmatmul.f32.gmra.mxu3 %v315_v0 }
  0xa2   : > { %1807 = vmatmul.f32.gmra.mxu0 %v2537_v29 }
  0xa4   : > { %1471 = vmatmul.f32.gmra.mxu1 %v2536_v25  ;;  %1584 = vmatmul.f32.gmra.mxu2 %v442_v32 }
  0xa6   : > { %1697 = vmatmul.f32.gmra.mxu3 %v3016_v16  ;;  %v1314_v16 = vld [vmem:[%s4096_s2 + $0x450] sm:$0xff] }
  0xa7   : > { %2233 = vmatpush.msra.mxu0 %v1314_v16 }
  0xa9   : > { %2234 = vmatpush.msra.mxu0 %v1313_v60  ;;  %v1294_v60 = vld [vmem:[%s4096_s2 + $0x3b0] sm:$0xff] }
  0xaa   : > { %1810 = vmatmul.f32.gmra.mxu0 %v2538_v37  ;;  %2124 = vmatpush.msra.mxu3 %v1294_v60 }
  0xab   : > { %2235 = vmatpush.msra.mxu0 %v1312_v19  ;;  %v2547_v19 = vld [vmem:[%s3010_s6 + $0xc9] sm:$0xff] }
  0xac   : > { %1474 = vmatmul.f32.gmra.mxu1 %v2537_v29  ;;  %1587 = vmatmul.f32.gmra.mxu2 %v443_v39  ;;  %v449_v39 = vld [vmem:[%s3010_s6 + $0x9a] sm:$0xff] }
  0xae   : > { %1700 = vmatmul.f32.gmra.mxu3 %v3056_v30  ;;  %v3404_v30 = vld [vmem:[%s4097_s3] ss:$0 sm:$0xff] }
  0xb1   : > { %v3395_v41 = vpop.f32.mrf.mxu1 }
  0xb2   : > { %1813 = vmatmul.f32.gmra.mxu0 %v2539_v40 }
  0xb4   : > { %1477 = vmatmul.f32.gmra.mxu1 %v2538_v37  ;;  %1590 = vmatmul.f32.gmra.mxu2 %v444_v42  ;;  %v1263_v37 = vld [vmem:[%s4096_s2 + $0x2b8] sm:$0xff] }
  0xb5   : > { %1897 = vmatpush.msra.mxu1 %v1263_v37 }
  0xb6   : > { %1703 = vmatmul.f32.gmra.mxu3 %v3102_v46 }
  0xb7   : > { %v1389_v45 = vpop.f32.mrf.mxu2  ;;  %v3410_v48 = vpop.f32.mrf.mxu0 }
  0xb8   : > { %v3414_v52 = vadd.f32 %v3404_v30, %v1389_v45 }
  0xb9   : > { %v3419_v54 = vpop.f32.mrf.mxu1  ;;  %v1413_v46 = vpop.f32.mrf.mxu3 }
  0xba   : > { %v3423_v56 = vadd.f32 %v3404_v30, %v1413_v46  ;;  %1816 = vmatmul.f32.gmra.mxu0 %v2540_v51  ;;  %v450_v46 = vld [vmem:[%s3010_s6 + $0xaa] sm:$0xff] }
  0xbc   : > { %1480 = vmatmul.f32.gmra.mxu1 %v2539_v40  ;;  %1593 = vmatmul.f32.gmra.mxu2 %v445_v55  ;;  %v1311_v40 = vld [vmem:[%s4096_s2 + $0x438] sm:$0xff] }
  0xbd   : > { %2236 = vmatpush.msra.mxu0 %v1311_v40  ;;  %v1261_v40 = vld [vmem:[%s4096_s2 + $0x2a8] sm:$0xff] }
  0xbe   : > { %1706 = vmatmul.f32.gmra.mxu3 %v3150_v62  ;;  %v1280_v62 = vld [vmem:[%s4096_s2 + $0x340] sm:$0xff] }
  0xbf   : > { %v1392_v61 = vpop.f32.mrf.mxu2  ;;  %v3429_v0 = vpop.f32.mrf.mxu0  ;;  %2009 = vmatpush.msra.mxu2 %v1280_v62  ;;  %v1262_v62 = vld [vmem:[%s4096_s2 + $0x2b0] sm:$0xff]  ;;  %2237 = vmatpush.msra.mxu0 %v1310_v12 }
  0xc0   : > { %v3433_v2 = vadd.f32 %v3404_v30, %v1392_v61  ;;  %1898 = vmatpush.msra.mxu1 %v1262_v62 }
  0xc1   : > { %v3435_v3 = vpop.f32.mrf.mxu1  ;;  %v1416_v4 = vpop.f32.mrf.mxu3 }
  0xc2   : > { %v3439_v6 = vadd.f32 %v3404_v30, %v1416_v4  ;;  %1819 = vmatmul.f32.gmra.mxu0 %v2541_v1  ;;  %v2546_v4 = vld [vmem:[%s3010_s6 + $0xc1] sm:$0xff]  ;;  %1899 = vmatpush.msra.mxu1 %v1261_v40 }
  0xc4   : > { %1483 = vmatmul.f32.gmra.mxu1 %v2540_v51  ;;  %1596 = vmatmul.f32.gmra.mxu2 %v446_v5 }
  0xc6   : > { %1709 = vmatmul.f32.gmra.mxu3 %v3199_v14 }
  0xc7   : > { %v1395_v8 = vpop.f32.mrf.mxu2  ;;  %v3448_v58 = vpop.f32.mrf.mxu0 }
  0xc8   : > { %v3452_v11 = vadd.f32 %v3404_v30, %v1395_v8  ;;  %v451_v8 = vld [vmem:[%s3010_s6 + $0xb2] sm:$0xff] }
  0xc9   : > { %v3457_v10 = vpop.f32.mrf.mxu1  ;;  %v1419_v14 = vpop.f32.mrf.mxu3 }
  0xca   : > { %v3461_v18 = vadd.f32 %v3404_v30, %v1419_v14  ;;  %1822 = vmatmul.f32.gmra.mxu0 %v2542_v9 }
  0xcc   : > { %1486 = vmatmul.f32.gmra.mxu1 %v2541_v1  ;;  %1599 = vmatmul.f32.gmra.mxu2 %v447_v13 }
  0xce   : > { %1712 = vmatmul.f32.gmra.mxu3 %v3248_v34  ;;  %v1279_v34 = vld [vmem:[%s4096_s2 + $0x338] sm:$0xff] }
  0xcf   : > { %v1398_v20 = vpop.f32.mrf.mxu2  ;;  %v3467_v21 = vpop.f32.mrf.mxu0  ;;  %2010 = vmatpush.msra.mxu2 %v1279_v34 }
  0xd0   : > { %v3471_v23 = vadd.f32 %v3404_v30, %v1398_v20 }
  0xd1   : > { %v3473_v24 = vpop.f32.mrf.mxu1  ;;  %v1422_v25 = vpop.f32.mrf.mxu3 }
  0xd2   : > { %v3477_v27 = vadd.f32 %v3404_v30, %v1422_v25  ;;  %1825 = vmatmul.f32.gmra.mxu0 %v2543_v22 }
  0xd4   : > { %1489 = vmatmul.f32.gmra.mxu1 %v2542_v9  ;;  %1602 = vmatmul.f32.gmra.mxu2 %v448_v26  ;;  %v452_v26 = vld [vmem:[%s3010_s6 + $0xc2] sm:$0xff] }
  0xd6   : > { %1715 = vmatmul.f32.gmra.mxu3 %v3288_v49 }
  0xd7   : > { %v1401_v29 = vpop.f32.mrf.mxu2  ;;  %v3486_v32 = vpop.f32.mrf.mxu0 }
  0xd8   : > { %v3490_v36 = vadd.f32 %v3404_v30, %v1401_v29 }
  0xd9   : > { %v3495_v38 = vpop.f32.mrf.mxu1  ;;  %v1425_v49 = vpop.f32.mrf.mxu3 }
  0xda   : > { %v3499_v16 = vadd.f32 %v3404_v30, %v1425_v49  ;;  %1828 = vmatmul.f32.gmra.mxu0 %v2544_v33 }
  0xdc   : > { %1492 = vmatmul.f32.gmra.mxu1 %v2543_v22  ;;  %1605 = vmatmul.f32.gmra.mxu2 %v449_v39  ;;  %v2548_v39 = vld [vmem:[%s3010_s6 + $0xd9] sm:$0xff] }
  0xde   : > { %1718 = vmatmul.f32.gmra.mxu3 %v3311_v57  ;;  %v1278_v57 = vld [vmem:[%s4096_s2 + $0x330] sm:$0xff] }
  0xdf   : > { %v1404_v42 = vpop.f32.mrf.mxu2  ;;  %v3505_v43 = vpop.f32.mrf.mxu0  ;;  %2011 = vmatpush.msra.mxu2 %v1278_v57 }
  0xe0   : > { %v3509_v45 = vadd.f32 %v3404_v30, %v1404_v42 }
  0xe1   : > { %v3511_v51 = vpop.f32.mrf.mxu1  ;;  %v1428_v53 = vpop.f32.mrf.mxu3  ;;  %2012 = vmatpush.msra.mxu2 %v1277_v28 }
  0xe2   : > { %v3515_v55 = vadd.f32 %v3404_v30, %v1428_v53  ;;  %1831 = vmatmul.f32.gmra.mxu0 %v2545_v44  ;;  %v453_v53 = vld [vmem:[%s3010_s6 + $0xca] sm:$0xff] }
  0xe4   : > { %1495 = vmatmul.f32.gmra.mxu1 %v2544_v33  ;;  %1608 = vmatmul.f32.gmra.mxu2 %v450_v46  ;;  %v1293_v33 = vld [vmem:[%s4096_s2 + $0x3a8] sm:$0xff] }
  0xe5   : > { %2125 = vmatpush.msra.mxu3 %v1293_v33 }
  0xe6   : > { %1721 = vmatmul.f32.gmra.mxu3 %v3019_v17 }
  0xe7   : > { %v1407_v61 = vpop.f32.mrf.mxu2  ;;  %v3524_v1 = vpop.f32.mrf.mxu0 }
  0xe8   : > { %v3528_v5 = vadd.f32 %v3404_v30, %v1407_v61  ;;  %v1309_v61 = vld [vmem:[%s4096_s2 + $0x428] sm:$0xff] }
  0xe9   : > { %v3533_v7 = vpop.f32.mrf.mxu1  ;;  %v1431_v17 = vpop.f32.mrf.mxu3  ;;  %2238 = vmatpush.msra.mxu0 %v1309_v61 }
  0xea   : > { %v3537_v9 = vadd.f32 %v3404_v30, %v1431_v17  ;;  %1834 = vmatmul.f32.gmra.mxu0 %v2546_v4  ;;  %v2549_v17 = vld [vmem:[%s3010_s6 + $0xe1] sm:$0xff] }
  0xec   : > { %1498 = vmatmul.f32.gmra.mxu1 %v2545_v44  ;;  %1611 = vmatmul.f32.gmra.mxu2 %v451_v8 }
  0xee   : > { %1724 = vmatmul.f32.gmra.mxu3 %v3059_v31  ;;  %v1342_v31 = vadd.f32 %v3404_v30, %v3410_v48 }
  0xef   : > { %v1410_v14 = vpop.f32.mrf.mxu2  ;;  %v3543_v13 = vpop.f32.mrf.mxu0 }
  0xf0   : > { %v3547_v20 = vadd.f32 %v3404_v30, %v1410_v14 }
  0xf1   : > { %v1434_v22 = vpop.f32.mrf.mxu3  ;;  %v1454_v25 = vpop.f32.mrf.mxu1 }
  0xf2   : > { %v3551_v34 = vadd.f32 %v3404_v30, %v1434_v22  ;;  %1837 = vmatmul.f32.gmra.mxu0 %v2547_v19  ;;  %v1455_v29 = vadd.f32 %v1454_v25, %v1342_v31  ;;  %v1292_v31 = vld [vmem:[%s4096_s2 + $0x3a0] sm:$0xff] }
  0xf3   : > { %2126 = vmatpush.msra.mxu3 %v1292_v31 }
  0xf4   : > { %1501 = vmatmul.f32.gmra.mxu1 %v2546_v4  ;;  %1614 = vmatmul.f32.gmra.mxu2 %v452_v26 }
  0xf6   : > { %1727 = vmatmul.f32.gmra.mxu3 %v3105_v47  ;;  %v1345_v47 = vadd.f32 %v3404_v30, %v3429_v0  ;;  %v454_v0 = vld [vmem:[%s3010_s6 + $0xda] sm:$0xff] }
  0xf7   : > { %v1567_v37 = vpop.f32.mrf.mxu2  ;;  %v1793_v49 = vpop.f32.mrf.mxu0 }
  0xf8   : > { %v1568_v48 = vadd.f32 %v1567_v37, %v1455_v29  ;;  %v1260_v37 = vld [vmem:[%s4096_s2 + $0x2a0] sm:$0xff] }
  0xf9   : > { %v1457_v42 = vpop.f32.mrf.mxu1  ;;  %v1680_v44 = vpop.f32.mrf.mxu3  ;;  %1900 = vmatpush.msra.mxu1 %v1260_v37 }
  0xfa   : > { %v1681_v46 = vadd.f32 %v1680_v44, %v1568_v48  ;;  %1840 = vmatmul.f32.gmra.mxu0 %v2548_v39  ;;  %v1458_v60 = vadd.f32 %v1457_v42, %v1345_v47  ;;  %v455_v48 = vld [vmem:[%s3010_s6 + $0xe2] sm:$0xff] }
  0xfc   : > { %v3569_v57 = vadd.f32 %v1793_v49, %v1681_v46  ;;  %1504 = vmatmul.f32.gmra.mxu1 %v2547_v19  ;;  %1617 = vmatmul.f32.gmra.mxu2 %v453_v53  ;;  %v1348_v19 = vadd.f32 %v3404_v30, %v3448_v58  ;;  %v2550_v58 = vld [vmem:[%s3010_s6 + $0xf1] sm:$0xff]  ;;  %v1308_v53 = vld [vmem:[%s4096_s2 + $0x420] sm:$0xff] }
  0xfd   : > { %2239 = vmatpush.msra.mxu0 %v1308_v53  ;;  %v458_v53 = vld [vmem:[%s3010_s6 + $0x10a] sm:$0xff] }
  0xfe   : > { %1730 = vmatmul.f32.gmra.mxu3 %v3153_v63  ;;  %v1276_v63 = vld [vmem:[%s4096_s2 + $0x320] sm:$0xff] }
  0xff   : > { %v1570_v4 = vpop.f32.mrf.mxu2  ;;  %v1796_v62 = vpop.f32.mrf.mxu0  ;;  %2013 = vmatpush.msra.mxu2 %v1276_v63 }
 0x100   : > { %v1571_v8 = vadd.f32 %v1570_v4, %v1458_v60  ;;  %v2551_v60 = vld [vmem:[%s3010_s6 + $0xf9] sm:$0xff] }
 0x101   : > { %v1460_v12 = vpop.f32.mrf.mxu1  ;;  %v1683_v14 = vpop.f32.mrf.mxu3 }
 0x102   : > { %v1684_v22 = vadd.f32 %v1683_v14, %v1571_v8  ;;  %1843 = vmatmul.f32.gmra.mxu0 %v2549_v17  ;;  %v1461_v26 = vadd.f32 %v1460_v12, %v1348_v19 }
 0x104   : > { %v3579_v25 = vadd.f32 %v1796_v62, %v1684_v22  ;;  %1507 = vmatmul.f32.gmra.mxu1 %v2548_v39  ;;  %1620 = vmatmul.f32.gmra.mxu2 %v454_v0  ;;  %v1291_v0 = vld [vmem:[%s4096_s2 + $0x398] sm:$0xff] }
 0x105   : > { %2127 = vmatpush.msra.mxu3 %v1291_v0 }
 0x106   : > { %1733 = vmatmul.f32.gmra.mxu3 %v3202_v15  ;;  %v1351_v15 = vadd.f32 %v3404_v30, %v3467_v21  ;;  %v456_v21 = vld [vmem:[%s3010_s6 + $0xf2] sm:$0xff] }
 0x107   : > { %v1573_v28 = vpop.f32.mrf.mxu2  ;;  %v1799_v29 = vpop.f32.mrf.mxu0 }
 0x108   : > { %v1574_v33 = vadd.f32 %v1573_v28, %v1461_v26  ;;  %v1259_v26 = vld [vmem:[%s4096_s2 + $0x298] sm:$0xff] }
 0x109   : > { %v1463_v49 = vpop.f32.mrf.mxu1  ;;  %v1686_v39 = vpop.f32.mrf.mxu3  ;;  %1901 = vmatpush.msra.mxu1 %v1259_v26  ;;  %v1363_v26 = vadd.f32 %v3404_v30, %v3543_v13 }
 0x10a   : > { %v1687_v40 = vadd.f32 %v1686_v39, %v1574_v33  ;;  %1846 = vmatmul.f32.gmra.mxu0 %v2550_v58  ;;  %v1464_v44 = vadd.f32 %v1463_v49, %v1351_v15  ;;  %v1307_v49 = vld [vmem:[%s4096_s2 + $0x418] sm:$0xff] }
 0x10b   : > { %2240 = vmatpush.msra.mxu0 %v1307_v49 }
 0x10c   : > { %v3595_v42 = vadd.f32 %v1799_v29, %v1687_v40  ;;  %1510 = vmatmul.f32.gmra.mxu1 %v2549_v17  ;;  %1623 = vmatmul.f32.gmra.mxu2 %v455_v48  ;;  %v1354_v17 = vadd.f32 %v3404_v30, %v3486_v32  ;;  %v3615_v32 = vld [vmem:[%s3010_s6 + $0x109] sm:$0xff]  ;;  %v457_v29 = vld [vmem:[%s3010_s6 + $0xfa] sm:$0xff]  ;;  %v3631_v40 = vld [vmem:[%s3010_s6 + $0x111] sm:$0xff] }
 0x10e   : > { %1736 = vmatmul.f32.gmra.mxu3 %v3251_v35  ;;  %v1275_v35 = vld [vmem:[%s4096_s2 + $0x318] sm:$0xff] }
 0x10f   : > { %v1576_v46 = vpop.f32.mrf.mxu2  ;;  %v1802_v47 = vpop.f32.mrf.mxu0  ;;  %2014 = vmatpush.msra.mxu2 %v1275_v35  ;;  %v1258_v35 = vld [vmem:[%s4096_s2 + $0x290] sm:$0xff] }
 0x110   : > { %v1577_v61 = vadd.f32 %v1576_v46, %v1464_v44  ;;  %1902 = vmatpush.msra.mxu1 %v1258_v35  ;;  %v3694_v35 = vld [vmem:[%s3010_s6 + $0x12a] sm:$0xff] }
 0x111   : > { %v1466_v4 = vpop.f32.mrf.mxu1  ;;  %v1689_v62 = vpop.f32.mrf.mxu3 }
 0x112   : > { %v1690_v8 = vadd.f32 %v1689_v62, %v1577_v61  ;;  %1849 = vmatmul.f32.gmra.mxu0 %v2551_v60  ;;  %v1467_v14 = vadd.f32 %v1466_v4, %v1354_v17  ;;  %v1274_v61 = vld [vmem:[%s4096_s2 + $0x310] sm:$0xff] }
 0x113   : > { %2015 = vmatpush.msra.mxu2 %v1274_v61  ;;  %v1290_v62 = vld [vmem:[%s4096_s2 + $0x390] sm:$0xff] }
 0x114   : > { %v3605_v12 = vadd.f32 %v1802_v47, %v1690_v8  ;;  %1513 = vmatmul.f32.gmra.mxu1 %v2550_v58  ;;  %1626 = vmatmul.f32.gmra.mxu2 %v456_v21  ;;  %v1357_v58 = vadd.f32 %v3404_v30, %v3505_v43  ;;  %v2524_v47 = vld [vmem:[%s3010_s6 + $0x120] sm:$0xff] }
 0x115   : > { %v3648_v8 = vld [vmem:[%s3010_s6 + $0x121] sm:$0xff]  ;;  %2128 = vmatpush.msra.mxu3 %v1290_v62 }
 0x116   : > { %1739 = vmatmul.f32.gmra.mxu3 %v3291_v50 }
 0x117   : > { %v1579_v22 = vpop.f32.mrf.mxu2  ;;  %v1805_v19 = vpop.f32.mrf.mxu0 }
 0x118   : > { %v1580_v63 = vadd.f32 %v1579_v22, %v1467_v14  ;;  %v3654_v22 = vld [vmem:[%s3010_s6 + $0x112] sm:$0xff] }
 0x119   : > { %v1469_v31 = vpop.f32.mrf.mxu1  ;;  %v1692_v28 = vpop.f32.mrf.mxu3 }
 0x11a   : > { %v1693_v50 = vadd.f32 %v1692_v28, %v1580_v63  ;;  %1852 = vmatmul.f32.gmra.mxu0 %v3615_v32  ;;  %v1470_v37 = vadd.f32 %v1469_v31, %v1357_v58  ;;  %v2525_v63 = vld [vmem:[%s3010_s6 + $0x128] sm:$0xff] }
 0x11c   : > { %v3624_v33 = vadd.f32 %v1805_v19, %v1693_v50  ;;  %1516 = vmatmul.f32.gmra.mxu1 %v2551_v60  ;;  %1629 = vmatmul.f32.gmra.mxu2 %v457_v29  ;;  %v1306_v29 = vld [vmem:[%s4096_s2 + $0x410] sm:$0xff] }
 0x11d   : > { %2241 = vmatpush.msra.mxu0 %v1306_v29 }
 0x11e   : > { %1742 = vmatmul.f32.gmra.mxu3 %v3314_v59  ;;  %v1360_v59 = vadd.f32 %v3404_v30, %v3524_v1 }
 0x11f   : > { %v1582_v39 = vpop.f32.mrf.mxu2  ;;  %v1808_v48 = vpop.f32.mrf.mxu0 }
 0x120   : > { %v1583_v15 = vadd.f32 %v1582_v39, %v1470_v37  ;;  %v3668_v37 = vld [vmem:[%s3010_s6 + $0x129] sm:$0xff] }
 0x121   : > { %v1472_v44 = vpop.f32.mrf.mxu1  ;;  %v1695_v43 = vpop.f32.mrf.mxu3 }
 0x122   : > { %v1696_v46 = vadd.f32 %v1695_v43, %v1583_v15  ;;  %1855 = vmatmul.f32.gmra.mxu0 %v3631_v40  ;;  %v1473_v4 = vadd.f32 %v1472_v44, %v1360_v59  ;;  %v2526_v44 = vld [vmem:[%s3010_s6 + $0x138] sm:$0xff]  ;;  %v1366_v43 = vadd.f32 %v3404_v30, %v3395_v41  ;;  %v1289_v59 = vld [vmem:[%s4096_s2 + $0x388] sm:$0xff] }
 0x123   : > { %2129 = vmatpush.msra.mxu3 %v1289_v59 }
 0x124   : > { %v3638_v60 = vadd.f32 %v1808_v48, %v1696_v46  ;;  %1519 = vmatmul.f32.gmra.mxu1 %v3615_v32  ;;  %1632 = vmatmul.f32.gmra.mxu2 %v458_v53  ;;  %v3671_v48 = vld [vmem:[%s3010_s6 + $0x122] sm:$0xff] }
 0x125   : > { %v1273_v46 = vld [vmem:[%s4096_s2 + $0x308] sm:$0xff] }
 0x126   : > { %1745 = vmatmul.f32.gmra.mxu3 %v2524_v47  ;;  %2016 = vmatpush.msra.mxu2 %v1273_v46 }
 0x127   : > { %v1585_v21 = vpop.f32.mrf.mxu2  ;;  %v1811_v1 = vpop.f32.mrf.mxu0 }
 0x128   : > { %v1586_v17 = vadd.f32 %v1585_v21, %v1473_v4  ;;  %v3688_v4 = vld [vmem:[%s3010_s6 + $0x139] sm:$0xff]  ;;  %v1257_v21 = vld [vmem:[%s4096_s2 + $0x288] sm:$0xff] }
 0x129   : > { %v1475_v14 = vpop.f32.mrf.mxu1  ;;  %v1698_v0 = vpop.f32.mrf.mxu3  ;;  %1903 = vmatpush.msra.mxu1 %v1257_v21 }
 0x12a   : > { %v1699_v19 = vadd.f32 %v1698_v0, %v1586_v17  ;;  %1858 = vmatmul.f32.gmra.mxu0 %v3648_v8  ;;  %v1476_v28 = vadd.f32 %v1475_v14, %v1363_v26  ;;  %v2527_v0 = vld [vmem:[%s3010_s6 + $0x140] sm:$0xff] }
 0x12c   : > { %v3660_v31 = vadd.f32 %v1811_v1, %v1699_v19  ;;  %1522 = vmatmul.f32.gmra.mxu1 %v3631_v40  ;;  %1635 = vmatmul.f32.gmra.mxu2 %v3654_v22  ;;  %v1369_v19 = vadd.f32 %v3404_v30, %v3419_v54 }
 0x12e   : > { %1748 = vmatmul.f32.gmra.mxu3 %v2525_v63 }
 0x12f   : > { %v1588_v50 = vpop.f32.mrf.mxu2  ;;  %v1814_v58 = vpop.f32.mrf.mxu0 }
 0x130   : > { %v1589_v49 = vadd.f32 %v1588_v50, %v1476_v28  ;;  %v1305_v28 = vld [vmem:[%s4096_s2 + $0x408] sm:$0xff] }
 0x131   : > { %v1478_v13 = vpop.f32.mrf.mxu1  ;;  %v1701_v39 = vpop.f32.mrf.mxu3  ;;  %2242 = vmatpush.msra.mxu0 %v1305_v28  ;;  %v1375_v28 = vadd.f32 %v3404_v30, %v3457_v10 }
 0x132   : > { %v1702_v15 = vadd.f32 %v1701_v39, %v1589_v49  ;;  %1861 = vmatmul.f32.gmra.mxu0 %v3668_v37  ;;  %v1479_v47 = vadd.f32 %v1478_v13, %v1366_v43  ;;  %v3711_v39 = vld [vmem:[%s3010_s6 + $0x13a] sm:$0xff]  ;;  %v1372_v43 = vadd.f32 %v3404_v30, %v3435_v3 }
 0x134   : > { %v3677_v53 = vadd.f32 %v1814_v58, %v1702_v15  ;;  %1525 = vmatmul.f32.gmra.mxu1 %v3648_v8  ;;  %1638 = vmatmul.f32.gmra.mxu2 %v3671_v48  ;;  %v3708_v58 = vld [vmem:[%s3010_s6 + $0x141] sm:$0xff] }
 0x136   : > { %1751 = vmatmul.f32.gmra.mxu3 %v2526_v44  ;;  %v2528_v44 = vld [vmem:[%s3010_s6 + $0x150] sm:$0xff] }
 0x137   : > { %v1591_v41 = vpop.f32.mrf.mxu2  ;;  %v1817_v61 = vpop.f32.mrf.mxu0 }
 0x138   : > { %v1592_v62 = vadd.f32 %v1591_v41, %v1479_v47  ;;  %v1272_v47 = vld [vmem:[%s4096_s2 + $0x300] sm:$0xff] }
 0x139   : > { %v1481_v1 = vpop.f32.mrf.mxu1  ;;  %v1704_v17 = vpop.f32.mrf.mxu3  ;;  %2017 = vmatpush.msra.mxu2 %v1272_v47  ;;  %v1288_v41 = vld [vmem:[%s4096_s2 + $0x380] sm:$0xff]  ;;  %v3754_v47 = vld [vmem:[%s3010_s6 + $0x152] sm:$0xff] }
 0x13a   : > { %v1705_v14 = vadd.f32 %v1704_v17, %v1592_v62  ;;  %1864 = vmatmul.f32.gmra.mxu0 %v3688_v4  ;;  %v1482_v26 = vadd.f32 %v1481_v1, %v1369_v19  ;;  %v3728_v62 = vld [vmem:[%s3010_s6 + $0x151] sm:$0xff]  ;;  %2130 = vmatpush.msra.mxu3 %v1288_v41  ;;  %v1256_v1 = vld [vmem:[%s4096_s2 + $0x280] sm:$0xff]  ;;  %v3758_v41 = vld [vmem:[%s3010_s6 + $0x168] sm:$0xff] }
 0x13b   : > { %1904 = vmatpush.msra.mxu1 %v1256_v1 }
 0x13c   : > { %v3700_v63 = vadd.f32 %v1817_v61, %v1705_v14  ;;  %1528 = vmatmul.f32.gmra.mxu1 %v3668_v37  ;;  %1641 = vmatmul.f32.gmra.mxu2 %v3694_v35 }
 0x13e   : > { %1754 = vmatmul.f32.gmra.mxu3 %v2527_v0  ;;  %v3734_v0 = vld [vmem:[%s3010_s6 + $0x142] sm:$0xff] }
 0x13f   : > { %v1594_v29 = vpop.f32.mrf.mxu2  ;;  %v1820_v50 = vpop.f32.mrf.mxu0 }
 0x140   : > { %v1595_v49 = vadd.f32 %v1594_v29, %v1482_v26  ;;  %v3738_v26 = vld [vmem:[%s3010_s6 + $0x158] sm:$0xff] }
 0x141   : > { %v1484_v54 = vpop.f32.mrf.mxu1  ;;  %v1707_v13 = vpop.f32.mrf.mxu3 }
 0x142   : > { %v1708_v15 = vadd.f32 %v1707_v13, %v1595_v49  ;;  %1867 = vmatmul.f32.gmra.mxu0 %v3708_v58  ;;  %v1485_v59 = vadd.f32 %v1484_v54, %v1372_v43  ;;  %v1304_v49 = vld [vmem:[%s4096_s2 + $0x400] sm:$0xff] }
 0x143   : > { %2243 = vmatpush.msra.mxu0 %v1304_v49  ;;  %v3771_v49 = vld [vmem:[%s3010_s6 + $0x15a] sm:$0xff] }
 0x144   : > { %v3717_v46 = vadd.f32 %v1820_v50, %v1708_v15  ;;  %1531 = vmatmul.f32.gmra.mxu1 %v3688_v4  ;;  %1644 = vmatmul.f32.gmra.mxu2 %v3711_v39  ;;  %v3751_v15 = vld [vmem:[%s3010_s6 + $0x159] sm:$0xff] }
 0x146   : > { %1757 = vmatmul.f32.gmra.mxu3 %v2528_v44 }
 0x147   : > { %v1597_v3 = vpop.f32.mrf.mxu2  ;;  %v1823_v61 = vpop.f32.mrf.mxu0 }
 0x148   : > { %v1598_v21 = vadd.f32 %v1597_v3, %v1485_v59  ;;  %v1378_v3 = vadd.f32 %v3404_v30, %v3473_v24 }
 0x149   : > { %v1487_v17 = vpop.f32.mrf.mxu1  ;;  %v1710_v14 = vpop.f32.mrf.mxu3 }
 0x14a   : > { %v1711_v19 = vadd.f32 %v1710_v14, %v1598_v21  ;;  %1870 = vmatmul.f32.gmra.mxu0 %v3728_v62  ;;  %v1488_v50 = vadd.f32 %v1487_v17, %v1375_v28  ;;  %v3768_v14 = vld [vmem:[%s3010_s6 + $0x169] sm:$0xff] }
 0x14c   : > { %v3742_v29 = vadd.f32 %v1823_v61, %v1711_v19  ;;  %1534 = vmatmul.f32.gmra.mxu1 %v3708_v58  ;;  %1647 = vmatmul.f32.gmra.mxu2 %v3734_v0 }
 0x14e   : > { %1760 = vmatmul.f32.gmra.mxu3 %v3738_v26 }
 0x14f   : > { %v1600_v54 = vpop.f32.mrf.mxu2  ;;  %v1826_v13 = vpop.f32.mrf.mxu0 }
 0x150   : > { %v1601_v10 = vadd.f32 %v1600_v54, %v1488_v50  ;;  %v3775_v54 = vld [vmem:[%s3010_s6 + $0x170] sm:$0xff] }
 0x151   : > { %v1490_v44 = vpop.f32.mrf.mxu1  ;;  %v1713_v43 = vpop.f32.mrf.mxu3  ;;  %4109 = vst [vmem:[#allocation7_spill] sm:$0xff] %v3775_v54 }
 0x152   : > { %v1714_v59 = vadd.f32 %v1713_v43, %v1601_v10  ;;  %1873 = vmatmul.f32.gmra.mxu0 %v3751_v15  ;;  %v1491_v21 = vadd.f32 %v1490_v44, %v1378_v3  ;;  %v3787_v3 = vld [vmem:[%s3010_s6 + $0x171] sm:$0xff] }
 0x153   : > { %4111 = vst [vmem:[#allocation9_spill] sm:$0xff] %v3787_v3 }
 0x154   : > { %v3762_v61 = vadd.f32 %v1826_v13, %v1714_v59  ;;  %1537 = vmatmul.f32.gmra.mxu1 %v3728_v62  ;;  %1650 = vmatmul.f32.gmra.mxu2 %v3754_v47  ;;  %v1381_v13 = vadd.f32 %v3404_v30, %v3495_v38 }
 0x156   : > { %4108 = vst [vmem:[#allocation6_spill] sm:$0xff] %v3762_v61  ;;  %1763 = vmatmul.f32.gmra.mxu3 %v3758_v41 }
 0x157   : > { %v1603_v1 = vpop.f32.mrf.mxu2  ;;  %v1829_v17 = vpop.f32.mrf.mxu0 }
 0x158   : > { %v1604_v19 = vadd.f32 %v1603_v1, %v1491_v21 }
 0x159   : > { %v1493_v28 = vpop.f32.mrf.mxu1  ;;  %v1716_v50 = vpop.f32.mrf.mxu3 }
 0x15a   : > { %v1717_v24 = vadd.f32 %v1716_v50, %v1604_v19  ;;  %1876 = vmatmul.f32.gmra.mxu0 %v3768_v14  ;;  %v1494_v44 = vadd.f32 %v1493_v28, %v1381_v13  ;;  %v3799_v28 = vld [vmem:[%s3792_s11] sm:$0xff]  ;;  %v1384_v50 = vadd.f32 %v3404_v30, %v3511_v51 }
 0x15b   : > { %4112 = vst [vmem:[#allocation10_spill] sm:$0xff] %v3799_v28 }
 0x15c   : > { %v3779_v10 = vadd.f32 %v1829_v17, %v1717_v24  ;;  %1540 = vmatmul.f32.gmra.mxu1 %v3751_v15  ;;  %1653 = vmatmul.f32.gmra.mxu2 %v3771_v49  ;;  %v3795_v17 = vld [vmem:[%s3010_s6 + $0x16a] sm:$0xff] }
 0x15e   : > { %4110 = vst [vmem:[#allocation8_spill] sm:$0xff] %v3779_v10  ;;  %1766 = vmatmul.f32.gmra.mxu3 %v3775_v54  ;;  %v3812_v54 = vld [vmem:[%s3010_s6 + $0x172] sm:$0xff] }
 0x15f   : > { %v1606_v43 = vpop.f32.mrf.mxu2  ;;  %v1832_v59 = vpop.f32.mrf.mxu0  ;;  %4115 = vst [vmem:[#allocation13_spill] sm:$0xff] %v3812_v54 }
 0x160   : > { %v1607_v21 = vadd.f32 %v1606_v43, %v1494_v44 }
 0x161   : > { %v1496_v38 = vpop.f32.mrf.mxu1  ;;  %v1719_v1 = vpop.f32.mrf.mxu3 }
 0x162   : > { %v1720_v19 = vadd.f32 %v1719_v1, %v1607_v21  ;;  %1879 = vmatmul.f32.gmra.mxu0 %v3787_v3  ;;  %v1497_v13 = vadd.f32 %v1496_v38, %v1384_v50  ;;  %v3809_v21 = vld [vmem:[%s3792_s11 + $0x1] sm:$0xff]  ;;  %v1387_v38 = vadd.f32 %v3404_v30, %v3533_v7  ;;  %v2592_v30 = vld [vmem:[%s3010_s6 + $0x30] sm:$0xff] }
 0x163   : > { %4114 = vst [vmem:[#allocation12_spill] sm:$0xff] %v3809_v21 }
 0x164   : > { %v3803_v24 = vadd.f32 %v1832_v59, %v1720_v19  ;;  %1543 = vmatmul.f32.gmra.mxu1 %v3768_v14  ;;  %1656 = vmatmul.f32.gmra.mxu2 %v3795_v17  ;;  %v3816_v59 = vld [vmem:[%s3792_s11 + $0x8] sm:$0xff] }
 0x165   : > { %4116 = vst [vmem:[#allocation14_spill] sm:$0xff] %v3816_v59 }
 0x166   : > { %4113 = vst [vmem:[#allocation11_spill] sm:$0xff] %v3803_v24  ;;  %1769 = vmatmul.f32.gmra.mxu3 %v3799_v28  ;;  %v2562_v28 = vld [vmem:[%s3010_s6 + $0x1a] sm:$0xff] }
 0x167   : > { %v1609_v44 = vpop.f32.mrf.mxu2  ;;  %v1835_v43 = vpop.f32.mrf.mxu0 }
 0x168   : > { %v1610_v1 = vadd.f32 %v1609_v44, %v1497_v13  ;;  %v3826_v44 = vld [vmem:[%s3792_s11 + $0x9] sm:$0xff] }
 0x169   : > { %v1499_v10 = vpop.f32.mrf.mxu1  ;;  %v1722_v61 = vpop.f32.mrf.mxu3 }
 0x16a   : > { %v1723_v51 = vadd.f32 %v1722_v61, %v1610_v1  ;;  %1882 = vmatmul.f32.gmra.mxu0 %v3809_v21  ;;  %v1500_v50 = vadd.f32 %v1499_v10, %v1387_v38 }
 0x16c   : > { %v3820_v19 = vadd.f32 %v1835_v43, %v1723_v51  ;;  %1546 = vmatmul.f32.gmra.mxu1 %v3787_v3  ;;  %1659 = vmatmul.f32.gmra.mxu2 %v3812_v54  ;;  %v2620_v43 = vld [vmem:[%s3010_s6 + $0x31] sm:$0xff]  ;;  %v2563_v3 = vld [vmem:[%s3010_s6 + $0x22] sm:$0xff] }
 0x16e   : > { %4117 = vst [vmem:[#allocation15_spill] sm:$0xff] %v3820_v19  ;;  %1772 = vmatmul.f32.gmra.mxu3 %v3816_v59 }
 0x16f   : > { %v1612_v13 = vpop.f32.mrf.mxu2  ;;  %v1838_v61 = vpop.f32.mrf.mxu0 }
 0x170   : > { %v1613_v1 = vadd.f32 %v1612_v13, %v1500_v50  ;;  %v2648_v13 = vld [vmem:[%s3010_s6 + $0x32] sm:$0xff] }
 0x171   : > { %v1502_v24 = vpop.f32.mrf.mxu1  ;;  %v1725_v21 = vpop.f32.mrf.mxu3 }
 0x172   : > { %v1726_v7 = vadd.f32 %v1725_v21, %v1613_v1  ;;  %1885 = vmatmul.f32.gmra.mxu0 %v3826_v44  ;;  %v1503_v51 = vadd.f32 %v1502_v24, %v3414_v52  ;;  %v2593_v21 = vld [vmem:[%s3010_s6 + $0x38] sm:$0xff] }
 0x174   : > { %v3832_v10 = vadd.f32 %v1838_v61, %v1726_v7  ;;  %1905 = vmatmul.f32.vlgmr.msra.gmra.mxu1 %v2562_v28  ;;  %2018 = vmatmul.f32.vlgmr.msra.gmra.mxu2 %v2592_v30  ;;  %v2621_v61 = vld [vmem:[%s3010_s6 + $0x39] sm:$0xff] }
 0x175   : > { %v2649_v30 = vld [vmem:[%s3010_s6 + $0x3a] sm:$0xff] }
 0x176   : > { %4118 = vst [vmem:[#allocation16_spill] sm:$0xff] %v3832_v10  ;;  %2131 = vmatmul.f32.vlgmr.msra.gmra.mxu3 %v2620_v43  ;;  %v2594_v10 = vld [vmem:[%s3010_s6 + $0x48] sm:$0xff] }
 0x177   : > { %v1615_v38 = vpop.f32.mrf.mxu2  ;;  %v1841_v50 = vpop.f32.mrf.mxu0 }
 0x178   : > { %v1616_v19 = vadd.f32 %v1615_v38, %v1503_v51 }
 0x179   : > { %v1505_v59 = vpop.f32.mrf.mxu1  ;;  %v1728_v54 = vpop.f32.mrf.mxu3 }
 0x17a   : > { %v1729_v1 = vadd.f32 %v1728_v54, %v1616_v19  ;;  %2244 = vmatmul.f32.vlgmr.msra.gmra.mxu0 %v2648_v13  ;;  %v1506_v52 = vadd.f32 %v1505_v59, %v3433_v2  ;;  %v2622_v19 = vld [vmem:[%s3010_s6 + $0x49] sm:$0xff] }
 0x17c   : > { %v3839_v7 = vadd.f32 %v1841_v50, %v1729_v1  ;;  %1908 = vmatmul.f32.gmra.mxu1 %v2563_v3  ;;  %2021 = vmatmul.f32.gmra.mxu2 %v2593_v21  ;;  %v2650_v21 = vld [vmem:[%s3010_s6 + $0x4a] sm:$0xff] }
 0x17e   : > { %2134 = vmatmul.f32.gmra.mxu3 %v2621_v61 }
 0x17f   : > { %v1618_v28 = vpop.f32.mrf.mxu2  ;;  %v1844_v24 = vpop.f32.mrf.mxu0 }
 0x180   : > { %v1619_v43 = vadd.f32 %v1618_v28, %v1506_v52  ;;  %v2595_v28 = vld [vmem:[%s3010_s6 + $0x50] sm:$0xff] }
 0x181   : > { %v1508_v51 = vpop.f32.mrf.mxu1  ;;  %v1731_v38 = vpop.f32.mrf.mxu3 }
 0x182   : > { %v1732_v54 = vadd.f32 %v1731_v38, %v1619_v43  ;;  %2247 = vmatmul.f32.gmra.mxu0 %v2649_v30  ;;  %v1509_v2 = vadd.f32 %v1508_v51, %v3452_v11  ;;  %v2623_v38 = vld [vmem:[%s3010_s6 + $0x51] sm:$0xff] }
 0x183   : > { %v2651_v51 = vld [vmem:[%s3010_s6 + $0x52] sm:$0xff] }
 0x184   : > { %v3845_v50 = vadd.f32 %v1844_v24, %v1732_v54  ;;  %1911 = vmatmul.f32.gmra.mxu1 %v2648_v13  ;;  %2024 = vmatmul.f32.gmra.mxu2 %v2594_v10 }
 0x186   : > { %2137 = vmatmul.f32.gmra.mxu3 %v2622_v19 }
 0x187   : > { %v1621_v3 = vpop.f32.mrf.mxu2  ;;  %v1847_v59 = vpop.f32.mrf.mxu0 }
 0x188   : > { %v1622_v1 = vadd.f32 %v1621_v3, %v1509_v2  ;;  %v2596_v3 = vld [vmem:[%s3010_s6 + $0x60] sm:$0xff] }
 0x189   : > { %v1511_v61 = vpop.f32.mrf.mxu1  ;;  %v1734_v52 = vpop.f32.mrf.mxu3 }
 0x18a   : > { %v1735_v43 = vadd.f32 %v1734_v52, %v1622_v1  ;;  %2250 = vmatmul.f32.gmra.mxu0 %v2650_v21  ;;  %v1512_v11 = vadd.f32 %v1511_v61, %v3471_v23  ;;  %v2624_v52 = vld [vmem:[%s3010_s6 + $0x61] sm:$0xff] }
 0x18c   : > { %v3851_v24 = vadd.f32 %v1847_v59, %v1735_v43  ;;  %1914 = vmatmul.f32.gmra.mxu1 %v2649_v30  ;;  %2027 = vmatmul.f32.gmra.mxu2 %v2595_v28  ;;  %v2652_v28 = vld [vmem:[%s3010_s6 + $0x62] sm:$0xff] }
 0x18e   : > { %2140 = vmatmul.f32.gmra.mxu3 %v2623_v38 }
 0x18f   : > { %v1624_v10 = vpop.f32.mrf.mxu2  ;;  %v1850_v13 = vpop.f32.mrf.mxu0 }
 0x190   : > { %v1625_v54 = vadd.f32 %v1624_v10, %v1512_v11  ;;  %v2597_v10 = vld [vmem:[%s3010_s6 + $0x68] sm:$0xff] }
 0x191   : > { %v1514_v19 = vpop.f32.mrf.mxu1  ;;  %v1737_v2 = vpop.f32.mrf.mxu3 }
 0x192   : > { %v1738_v1 = vadd.f32 %v1737_v2, %v1625_v54  ;;  %2253 = vmatmul.f32.gmra.mxu0 %v2651_v51  ;;  %v1515_v23 = vadd.f32 %v1514_v19, %v3490_v36  ;;  %v2625_v2 = vld [vmem:[%s3010_s6 + $0x69] sm:$0xff] }
 0x194   : > { %v3857_v59 = vadd.f32 %v1850_v13, %v1738_v1  ;;  %1917 = vmatmul.f32.gmra.mxu1 %v2650_v21  ;;  %2030 = vmatmul.f32.gmra.mxu2 %v2596_v3  ;;  %v2653_v3 = vld [vmem:[%s3010_s6 + $0x6a] sm:$0xff] }
 0x196   : > { %2143 = vmatmul.f32.gmra.mxu3 %v2624_v52 }
 0x197   : > { %v1627_v30 = vpop.f32.mrf.mxu2  ;;  %v1853_v61 = vpop.f32.mrf.mxu0 }
 0x198   : > { %v1628_v43 = vadd.f32 %v1627_v30, %v1515_v23  ;;  %v2598_v30 = vld [vmem:[%s3010_s6 + $0x78] sm:$0xff] }
 0x199   : > { %v1517_v38 = vpop.f32.mrf.mxu1  ;;  %v1740_v11 = vpop.f32.mrf.mxu3 }
 0x19a   : > { %v1741_v54 = vadd.f32 %v1740_v11, %v1628_v43  ;;  %2256 = vmatmul.f32.gmra.mxu0 %v2652_v28  ;;  %v1518_v36 = vadd.f32 %v1517_v38, %v3509_v45  ;;  %v2626_v11 = vld [vmem:[%s3010_s6 + $0x79] sm:$0xff] }
 0x19c   : > { %v3863_v13 = vadd.f32 %v1853_v61, %v1741_v54  ;;  %1920 = vmatmul.f32.gmra.mxu1 %v2651_v51  ;;  %2033 = vmatmul.f32.gmra.mxu2 %v2597_v10  ;;  %v2654_v10 = vld [vmem:[%s3010_s6 + $0x7a] sm:$0xff] }
 0x19e   : > { %2146 = vmatmul.f32.gmra.mxu3 %v2625_v2 }
 0x19f   : > { %v1630_v21 = vpop.f32.mrf.mxu2  ;;  %v1856_v19 = vpop.f32.mrf.mxu0 }
 0x1a0   : > { %v1631_v1 = vadd.f32 %v1630_v21, %v1518_v36  ;;  %v2599_v21 = vld [vmem:[%s3010_s6 + $0x80] sm:$0xff] }
 0x1a1   : > { %v1520_v52 = vpop.f32.mrf.mxu1  ;;  %v1743_v23 = vpop.f32.mrf.mxu3 }
 0x1a2   : > { %v1744_v43 = vadd.f32 %v1743_v23, %v1631_v1  ;;  %2259 = vmatmul.f32.gmra.mxu0 %v2653_v3  ;;  %v1521_v45 = vadd.f32 %v1520_v52, %v3528_v5  ;;  %v2627_v23 = vld [vmem:[%s3010_s6 + $0x81] sm:$0xff] }
 0x1a4   : > { %v3869_v61 = vadd.f32 %v1856_v19, %v1744_v43  ;;  %1923 = vmatmul.f32.gmra.mxu1 %v2652_v28  ;;  %2036 = vmatmul.f32.gmra.mxu2 %v2598_v30  ;;  %v2655_v30 = vld [vmem:[%s3010_s6 + $0x82] sm:$0xff] }
 0x1a6   : > { %2149 = vmatmul.f32.gmra.mxu3 %v2626_v11 }
 0x1a7   : > { %v1633_v51 = vpop.f32.mrf.mxu2  ;;  %v1859_v38 = vpop.f32.mrf.mxu0 }
 0x1a8   : > { %v1634_v54 = vadd.f32 %v1633_v51, %v1521_v45  ;;  %v2600_v51 = vld [vmem:[%s3010_s6 + $0x90] sm:$0xff] }
 0x1a9   : > { %v1523_v2 = vpop.f32.mrf.mxu1  ;;  %v1746_v36 = vpop.f32.mrf.mxu3 }
 0x1aa   : > { %v1747_v1 = vadd.f32 %v1746_v36, %v1634_v54  ;;  %2262 = vmatmul.f32.gmra.mxu0 %v2654_v10  ;;  %v1524_v5 = vadd.f32 %v1523_v2, %v3547_v20  ;;  %v2628_v36 = vld [vmem:[%s3010_s6 + $0x91] sm:$0xff] }
 0x1ac   : > { %v3875_v19 = vadd.f32 %v1859_v38, %v1747_v1  ;;  %1926 = vmatmul.f32.gmra.mxu1 %v2653_v3  ;;  %2039 = vmatmul.f32.gmra.mxu2 %v2599_v21  ;;  %v2656_v21 = vld [vmem:[%s3010_s6 + $0x92] sm:$0xff] }
 0x1ae   : > { %2152 = vmatmul.f32.gmra.mxu3 %v2627_v23 }
 0x1af   : > { %v1636_v28 = vpop.f32.mrf.mxu2  ;;  %v1862_v52 = vpop.f32.mrf.mxu0 }
 0x1b0   : > { %v1637_v43 = vadd.f32 %v1636_v28, %v1524_v5  ;;  %v2601_v28 = vld [vmem:[%s3010_s6 + $0x98] sm:$0xff] }
 0x1b1   : > { %v1526_v11 = vpop.f32.mrf.mxu1  ;;  %v1749_v45 = vpop.f32.mrf.mxu3 }
 0x1b2   : > { %v1750_v54 = vadd.f32 %v1749_v45, %v1637_v43  ;;  %2265 = vmatmul.f32.gmra.mxu0 %v2655_v30  ;;  %v1527_v20 = vadd.f32 %v1526_v11, %v3423_v56  ;;  %v2629_v45 = vld [vmem:[%s3010_s6 + $0x99] sm:$0xff] }
 0x1b4   : > { %v3881_v38 = vadd.f32 %v1862_v52, %v1750_v54  ;;  %1929 = vmatmul.f32.gmra.mxu1 %v2654_v10  ;;  %2042 = vmatmul.f32.gmra.mxu2 %v2600_v51  ;;  %v2657_v51 = vld [vmem:[%s3010_s6 + $0x9a] sm:$0xff] }
 0x1b6   : > { %2155 = vmatmul.f32.gmra.mxu3 %v2628_v36 }
 0x1b7   : > { %v1639_v3 = vpop.f32.mrf.mxu2  ;;  %v1865_v2 = vpop.f32.mrf.mxu0 }
 0x1b8   : > { %v1640_v1 = vadd.f32 %v1639_v3, %v1527_v20  ;;  %v2602_v3 = vld [vmem:[%s3010_s6 + $0xa8] sm:$0xff] }
 0x1b9   : > { %v1529_v23 = vpop.f32.mrf.mxu1  ;;  %v1752_v5 = vpop.f32.mrf.mxu3 }
 0x1ba   : > { %v1753_v43 = vadd.f32 %v1752_v5, %v1640_v1  ;;  %2268 = vmatmul.f32.gmra.mxu0 %v2656_v21  ;;  %v1530_v56 = vadd.f32 %v1529_v23, %v3439_v6  ;;  %v2630_v5 = vld [vmem:[%s3010_s6 + $0xa9] sm:$0xff] }
 0x1bc   : > { %v3887_v52 = vadd.f32 %v1865_v2, %v1753_v43  ;;  %1932 = vmatmul.f32.gmra.mxu1 %v2655_v30  ;;  %2045 = vmatmul.f32.gmra.mxu2 %v2601_v28  ;;  %v2658_v28 = vld [vmem:[%s3010_s6 + $0xaa] sm:$0xff] }
 0x1be   : > { %2158 = vmatmul.f32.gmra.mxu3 %v2629_v45 }
 0x1bf   : > { %v1642_v10 = vpop.f32.mrf.mxu2  ;;  %v1868_v11 = vpop.f32.mrf.mxu0 }
 0x1c0   : > { %v1643_v54 = vadd.f32 %v1642_v10, %v1530_v56  ;;  %v2603_v10 = vld [vmem:[%s3010_s6 + $0xb0] sm:$0xff] }
 0x1c1   : > { %v1532_v36 = vpop.f32.mrf.mxu1  ;;  %v1755_v20 = vpop.f32.mrf.mxu3 }
 0x1c2   : > { %v1756_v1 = vadd.f32 %v1755_v20, %v1643_v54  ;;  %2271 = vmatmul.f32.gmra.mxu0 %v2657_v51  ;;  %v1533_v6 = vadd.f32 %v1532_v36, %v3461_v18  ;;  %v2631_v20 = vld [vmem:[%s3010_s6 + $0xb1] sm:$0xff] }
 0x1c4   : > { %v3893_v2 = vadd.f32 %v1868_v11, %v1756_v1  ;;  %1935 = vmatmul.f32.gmra.mxu1 %v2656_v21  ;;  %2048 = vmatmul.f32.gmra.mxu2 %v2602_v3  ;;  %v2659_v3 = vld [vmem:[%s3010_s6 + $0xb2] sm:$0xff] }
 0x1c6   : > { %2161 = vmatmul.f32.gmra.mxu3 %v2630_v5 }
 0x1c7   : > { %v1645_v30 = vpop.f32.mrf.mxu2  ;;  %v1871_v23 = vpop.f32.mrf.mxu0 }
 0x1c8   : > { %v1646_v43 = vadd.f32 %v1645_v30, %v1533_v6  ;;  %v2604_v30 = vld [vmem:[%s3010_s6 + $0xc0] sm:$0xff] }
 0x1c9   : > { %v1535_v45 = vpop.f32.mrf.mxu1  ;;  %v1758_v56 = vpop.f32.mrf.mxu3 }
 0x1ca   : > { %v1759_v54 = vadd.f32 %v1758_v56, %v1646_v43  ;;  %2274 = vmatmul.f32.gmra.mxu0 %v2658_v28  ;;  %v1536_v18 = vadd.f32 %v1535_v45, %v3477_v27  ;;  %v2632_v56 = vld [vmem:[%s3010_s6 + $0xc1] sm:$0xff] }
 0x1cc   : > { %v3899_v11 = vadd.f32 %v1871_v23, %v1759_v54  ;;  %1938 = vmatmul.f32.gmra.mxu1 %v2657_v51  ;;  %2051 = vmatmul.f32.gmra.mxu2 %v2603_v10  ;;  %v2660_v10 = vld [vmem:[%s3010_s6 + $0xc2] sm:$0xff] }
 0x1ce   : > { %2164 = vmatmul.f32.gmra.mxu3 %v2631_v20 }
 0x1cf   : > { %v1648_v21 = vpop.f32.mrf.mxu2  ;;  %v1874_v36 = vpop.f32.mrf.mxu0 }
 0x1d0   : > { %v1649_v1 = vadd.f32 %v1648_v21, %v1536_v18  ;;  %v2605_v21 = vld [vmem:[%s3010_s6 + $0xc8] sm:$0xff] }
 0x1d1   : > { %v1538_v5 = vpop.f32.mrf.mxu1  ;;  %v1761_v6 = vpop.f32.mrf.mxu3 }
 0x1d2   : > { %v1762_v43 = vadd.f32 %v1761_v6, %v1649_v1  ;;  %2277 = vmatmul.f32.gmra.mxu0 %v2659_v3  ;;  %v1539_v27 = vadd.f32 %v1538_v5, %v3499_v16  ;;  %v2633_v6 = vld [vmem:[%s3010_s6 + $0xc9] sm:$0xff] }
 0x1d4   : > { %v3905_v23 = vadd.f32 %v1874_v36, %v1762_v43  ;;  %1941 = vmatmul.f32.gmra.mxu1 %v2658_v28  ;;  %2054 = vmatmul.f32.gmra.mxu2 %v2604_v30  ;;  %v2661_v30 = vld [vmem:[%s3010_s6 + $0xca] sm:$0xff] }
 0x1d6   : > { %2167 = vmatmul.f32.gmra.mxu3 %v2632_v56 }
 0x1d7   : > { %v1651_v51 = vpop.f32.mrf.mxu2  ;;  %v1877_v45 = vpop.f32.mrf.mxu0 }
 0x1d8   : > { %v1652_v54 = vadd.f32 %v1651_v51, %v1539_v27  ;;  %v2606_v51 = vld [vmem:[%s3010_s6 + $0xd8] sm:$0xff] }
 0x1d9   : > { %v1541_v20 = vpop.f32.mrf.mxu1  ;;  %v1764_v18 = vpop.f32.mrf.mxu3 }
 0x1da   : > { %v1765_v1 = vadd.f32 %v1764_v18, %v1652_v54  ;;  %2280 = vmatmul.f32.gmra.mxu0 %v2660_v10  ;;  %v1542_v16 = vadd.f32 %v1541_v20, %v3515_v55  ;;  %v2634_v18 = vld [vmem:[%s3010_s6 + $0xd9] sm:$0xff] }
 0x1dc   : > { %v3911_v36 = vadd.f32 %v1877_v45, %v1765_v1  ;;  %1944 = vmatmul.f32.gmra.mxu1 %v2659_v3  ;;  %2057 = vmatmul.f32.gmra.mxu2 %v2605_v21  ;;  %v2662_v21 = vld [vmem:[%s3010_s6 + $0xda] sm:$0xff] }
 0x1de   : > { %2170 = vmatmul.f32.gmra.mxu3 %v2633_v6 }
 0x1df   : > { %v1654_v28 = vpop.f32.mrf.mxu2  ;;  %v1880_v5 = vpop.f32.mrf.mxu0 }
 0x1e0   : > { %v1655_v43 = vadd.f32 %v1654_v28, %v1542_v16  ;;  %v2607_v28 = vld [vmem:[%s3010_s6 + $0xe0] sm:$0xff] }
 0x1e1   : > { %v1544_v56 = vpop.f32.mrf.mxu1  ;;  %v1767_v27 = vpop.f32.mrf.mxu3 }
 0x1e2   : > { %v1768_v54 = vadd.f32 %v1767_v27, %v1655_v43  ;;  %2283 = vmatmul.f32.gmra.mxu0 %v2661_v30  ;;  %v1545_v55 = vadd.f32 %v1544_v56, %v3537_v9  ;;  %v2635_v27 = vld [vmem:[%s3010_s6 + $0xe1] sm:$0xff] }
 0x1e4   : > { %v3917_v45 = vadd.f32 %v1880_v5, %v1768_v54  ;;  %1947 = vmatmul.f32.gmra.mxu1 %v2660_v10  ;;  %2060 = vmatmul.f32.gmra.mxu2 %v2606_v51  ;;  %v2663_v51 = vld [vmem:[%s3010_s6 + $0xe2] sm:$0xff] }
 0x1e6   : > { %2173 = vmatmul.f32.gmra.mxu3 %v2634_v18 }
 0x1e7   : > { %v1657_v3 = vpop.f32.mrf.mxu2  ;;  %v1883_v20 = vpop.f32.mrf.mxu0 }
 0x1e8   : > { %v1658_v1 = vadd.f32 %v1657_v3, %v1545_v55  ;;  %v2608_v3 = vld [vmem:[%s3010_s6 + $0xf0] sm:$0xff] }
 0x1e9   : > { %v1547_v6 = vpop.f32.mrf.mxu1  ;;  %v1770_v16 = vpop.f32.mrf.mxu3 }
 0x1ea   : > { %v1771_v43 = vadd.f32 %v1770_v16, %v1658_v1  ;;  %2286 = vmatmul.f32.gmra.mxu0 %v2662_v21  ;;  %v1548_v9 = vadd.f32 %v1547_v6, %v3551_v34 }
 0x1ec   : > { %v3923_v5 = vadd.f32 %v1883_v20, %v1771_v43  ;;  %1950 = vmatmul.f32.gmra.mxu1 %v2661_v30  ;;  %2063 = vmatmul.f32.gmra.mxu2 %v2607_v28  ;;  %v2636_v20 = vld [vmem:[%s3010_s6 + $0xf1] sm:$0xff] }
 0x1ed   : > { %v2664_v28 = vld [vmem:[%s3010_s6 + $0xf2] sm:$0xff] }
 0x1ee   : > { %2176 = vmatmul.f32.gmra.mxu3 %v2635_v27 }
 0x1ef   : > { %v1660_v10 = vpop.f32.mrf.mxu2  ;;  %v1886_v56 = vpop.f32.mrf.mxu0 }
 0x1f0   : > { %v1661_v54 = vadd.f32 %v1660_v10, %v1548_v9  ;;  %v2609_v10 = vld [vmem:[%s3010_s6 + $0xf8] sm:$0xff] }
 0x1f1   : > { %v1773_v18 = vpop.f32.mrf.mxu3  ;;  %v1906_v55 = vpop.f32.mrf.mxu1 }
 0x1f2   : > { %v1774_v1 = vadd.f32 %v1773_v18, %v1661_v54  ;;  %2289 = vmatmul.f32.gmra.mxu0 %v2663_v51  ;;  %v1907_v34 = vadd.f32 %v1906_v55, %v3569_v57 }
 0x1f4   : > { %v3929_v16 = vadd.f32 %v1886_v56, %v1774_v1  ;;  %1953 = vmatmul.f32.gmra.mxu1 %v2662_v21  ;;  %2066 = vmatmul.f32.gmra.mxu2 %v2608_v3  ;;  %v2637_v56 = vld [vmem:[%s3010_s6 + $0xf9] sm:$0xff] }
 0x1f5   : > { %v2665_v3 = vld [vmem:[%s3010_s6 + $0xfa] sm:$0xff] }
 0x1f6   : > { %2179 = vmatmul.f32.gmra.mxu3 %v2636_v20 }
 0x1f7   : > { %v2019_v30 = vpop.f32.mrf.mxu2  ;;  %v2245_v6 = vpop.f32.mrf.mxu0 }
 0x1f8   : > { %v2020_v43 = vadd.f32 %v2019_v30, %v1907_v34  ;;  %v2610_v30 = vld [vmem:[%s3010_s6 + $0x108] sm:$0xff] }
 0x1f9   : > { %v1909_v27 = vpop.f32.mrf.mxu1  ;;  %v2132_v9 = vpop.f32.mrf.mxu3 }
 0x1fa   : > { %v2133_v54 = vadd.f32 %v2132_v9, %v2020_v43  ;;  %2292 = vmatmul.f32.gmra.mxu0 %v2664_v28  ;;  %v1910_v57 = vadd.f32 %v1909_v27, %v3579_v25  ;;  %v2666_v9 = vld [vmem:[%s3010_s6 + $0x10a] sm:$0xff] }
 0x1fc   : > { %v2246_v21 = vadd.f32 %v2245_v6, %v2133_v54  ;;  %1956 = vmatmul.f32.gmra.mxu1 %v2663_v51  ;;  %2069 = vmatmul.f32.gmra.mxu2 %v2609_v10 }
 0x1fe   : > { %2341 = vst [vmem:[%s3939_s12] sm:$0xff] %v2246_v21  ;;  %2182 = vmatmul.f32.gmra.mxu3 %v2637_v56  ;;  %v2611_v21 = vld [vmem:[%s3010_s6 + $0x110] sm:$0xff] }
 0x1ff   : > { %v2022_v18 = vpop.f32.mrf.mxu2  ;;  %v2248_v55 = vpop.f32.mrf.mxu0 }
 0x200   : > { %v2023_v1 = vadd.f32 %v2022_v18, %v1910_v57 }
 0x201   : > { %v1912_v20 = vpop.f32.mrf.mxu1  ;;  %v2135_v34 = vpop.f32.mrf.mxu3 }
 0x202   : > { %v2136_v6 = vadd.f32 %v2135_v34, %v2023_v1  ;;  %2295 = vmatmul.f32.gmra.mxu0 %v2665_v3  ;;  %v1913_v25 = vadd.f32 %v1912_v20, %v3595_v42  ;;  %v2612_v34 = vld [vmem:[%s3010_s6 + $0x120] sm:$0xff] }
 0x204   : > { %v2249_v51 = vadd.f32 %v2248_v55, %v2136_v6  ;;  %1959 = vmatmul.f32.gmra.mxu1 %v2664_v28  ;;  %2072 = vmatmul.f32.gmra.mxu2 %v2610_v30 }
 0x206   : > { %2342 = vst [vmem:[%s3939_s12 + $0x8] sm:$0xff] %v2249_v51  ;;  %2185 = vmatmul.f32.gmra.mxu3 %v3615_v32 }
 0x207   : > { %v2025_v43 = vpop.f32.mrf.mxu2  ;;  %v2251_v27 = vpop.f32.mrf.mxu0 }
 0x208   : > { %v2026_v10 = vadd.f32 %v2025_v43, %v1913_v25 }
 0x209   : > { %v1915_v54 = vpop.f32.mrf.mxu1  ;;  %v2138_v56 = vpop.f32.mrf.mxu3 }
 0x20a   : > { %v2139_v57 = vadd.f32 %v2138_v56, %v2026_v10  ;;  %2298 = vmatmul.f32.gmra.mxu0 %v2666_v9  ;;  %v1916_v42 = vadd.f32 %v1915_v54, %v3605_v12  ;;  %v2613_v10 = vld [vmem:[%s3010_s6 + $0x128] sm:$0xff] }
 0x20c   : > { %v2252_v18 = vadd.f32 %v2251_v27, %v2139_v57  ;;  %1962 = vmatmul.f32.gmra.mxu1 %v2665_v3  ;;  %2075 = vmatmul.f32.gmra.mxu2 %v2611_v21  ;;  %v2583_v27 = vld [vmem:[%s3010_s6 + $0x112] sm:$0xff] }
 0x20e   : > { %2343 = vst [vmem:[%s3939_s12 + $0x10] sm:$0xff] %v2252_v18  ;;  %2188 = vmatmul.f32.gmra.mxu3 %v3631_v40  ;;  %v2584_v18 = vld [vmem:[%s3010_s6 + $0x122] sm:$0xff] }
 0x20f   : > { %v2028_v32 = vpop.f32.mrf.mxu2  ;;  %v2254_v28 = vpop.f32.mrf.mxu0 }
 0x210   : > { %v2029_v55 = vadd.f32 %v2028_v32, %v1916_v42  ;;  %v2614_v42 = vld [vmem:[%s3010_s6 + $0x138] sm:$0xff] }
 0x211   : > { %v1918_v1 = vpop.f32.mrf.mxu1  ;;  %v2141_v20 = vpop.f32.mrf.mxu3 }
 0x212   : > { %v2142_v30 = vadd.f32 %v2141_v20, %v2029_v55  ;;  %2301 = vmatmul.f32.gmra.mxu0 %v3654_v22  ;;  %v1919_v3 = vadd.f32 %v1918_v1, %v3624_v33 }
 0x214   : > { %v2255_v6 = vadd.f32 %v2254_v28, %v2142_v30  ;;  %1965 = vmatmul.f32.gmra.mxu1 %v2666_v9  ;;  %2078 = vmatmul.f32.gmra.mxu2 %v2612_v34  ;;  %v2585_v34 = vld [vmem:[%s3010_s6 + $0x12a] sm:$0xff]  ;;  %v2615_v30 = vld [vmem:[%s3010_s6 + $0x140] sm:$0xff] }
 0x216   : > { %2344 = vst [vmem:[%s3939_s12 + $0x18] sm:$0xff] %v2255_v6  ;;  %2191 = vmatmul.f32.gmra.mxu3 %v3648_v8 }
 0x217   : > { %v2031_v12 = vpop.f32.mrf.mxu2  ;;  %v2257_v40 = vpop.f32.mrf.mxu0 }
 0x218   : > { %v2032_v51 = vadd.f32 %v2031_v12, %v1919_v3 }
 0x219   : > { %v1921_v25 = vpop.f32.mrf.mxu1  ;;  %v2144_v43 = vpop.f32.mrf.mxu3 }
 0x21a   : > { %v2145_v54 = vadd.f32 %v2144_v43, %v2032_v51  ;;  %2304 = vmatmul.f32.gmra.mxu0 %v3671_v48  ;;  %v1922_v33 = vadd.f32 %v1921_v25, %v3638_v60  ;;  %v2586_v25 = vld [vmem:[%s3010_s6 + $0x13a] sm:$0xff]  ;;  %v2616_v43 = vld [vmem:[%s3010_s6 + $0x150] sm:$0xff]  ;;  %s2683_s6 = sshll.u32 %s2863_s18, 8  ;;  %s2374_s18 = scalar_lea.sflag [#allocation4], %s268_s9 }
 0x21b   : > { %s2387_s22 = scalar_lea.hbm %s4098_s4, %s2683_s6 }
 0x21c   : > { %v2258_v22 = vadd.f32 %v2257_v40, %v2145_v54  ;;  %1968 = vmatmul.f32.gmra.mxu1 %v2583_v27  ;;  %2081 = vmatmul.f32.gmra.mxu2 %v2613_v10  ;;  %s2390_s26 = sshll.u32 %s2387_s22, 4  ;;  %s2391_s26 = int_to_ptr.hbm [resolvable:$true] %s2390_s26 }
 0x21d   : > { %s2807_s29 = sshra.s32 %s2391_s26, 4  ;;  %s2808_s29 = int_to_ptr.hbm [resolvable:$true] %s2807_s29 }
 0x21e   : > { %2345 = vst [vmem:[%s3939_s12 + $0x20] sm:$0xff] %v2258_v22  ;;  %2194 = vmatmul.f32.gmra.mxu3 %v3668_v37  ;;  %s2809_s30 = scalar_lea.hbm %s2808_s29, 256  ;;  %p2814_p1 = scmp.lt.s32.totalorder %s2808_s29, %s4098_s4 }
 0x21f   : > { %v2034_v8 = vpop.f32.mrf.mxu2  ;;  %v2260_v9 = vpop.f32.mrf.mxu0  ;;  %p2810_p12 = scmp.ne.s32.totalorder %s2808_s29, %s2809_s30  ;;  %p2815_p2 = scmp.lt.s32.totalorder %s2813_s8, %s2809_s30 }
 0x220   : > { %v2035_v56 = vadd.f32 %v2034_v8, %v1922_v33 }
 0x221   : > { %v1924_v21 = vpop.f32.mrf.mxu1  ;;  %v2147_v57 = vpop.f32.mrf.mxu3  ;;  %p2811_p13 = pnand %p2810_p12, %p2940_p4  ;;  %p2816_p3 = por %p2815_p2, %p2814_p1 }
 0x222   : > { %v2148_v32 = vadd.f32 %v2147_v57, %v2035_v56  ;;  %2307 = vmatmul.f32.gmra.mxu0 %v3694_v35  ;;  %v1925_v60 = vadd.f32 %v1924_v21, %v3660_v31 }
 0x223   : > { %p2812_p0 = pneg %p2811_p13 }
 0x224   : > { %v2261_v48 = vadd.f32 %v2260_v9, %v2148_v32  ;;  %1971 = vmatmul.f32.gmra.mxu1 %v2584_v18  ;;  %2084 = vmatmul.f32.gmra.mxu2 %v2614_v42 }
 0x225   : > { %p2817_p5 = pnand %p2816_p3, %p2812_p0 }
 0x226   : > { %2346 = vst [vmem:[%s3939_s12 + $0x28] sm:$0xff] %v2261_v48  ;;  %2197 = vmatmul.f32.gmra.mxu3 %v3688_v4 }
 0x227   : > { %v2037_v37 = vpop.f32.mrf.mxu2  ;;  %v2263_v28 = vpop.f32.mrf.mxu0 }
 0x228   : > { %v2038_v55 = vadd.f32 %v2037_v37, %v1925_v60 }
 0x229   : > { %v1927_v1 = vpop.f32.mrf.mxu1  ;;  %v2150_v20 = vpop.f32.mrf.mxu3 }
 0x22a   : > { %v2151_v6 = vadd.f32 %v2150_v20, %v2038_v55  ;;  %2310 = vmatmul.f32.gmra.mxu0 %v3711_v39  ;;  %v1928_v31 = vadd.f32 %v1927_v1, %v3677_v53 }
 0x22c   : > { %v2264_v35 = vadd.f32 %v2263_v28, %v2151_v6  ;;  %1974 = vmatmul.f32.gmra.mxu1 %v2585_v34  ;;  %2087 = vmatmul.f32.gmra.mxu2 %v2615_v30 }
 0x22e   : > { %2347 = vst [vmem:[%s3939_s12 + $0x30] sm:$0xff] %v2264_v35  ;;  %2200 = vmatmul.f32.gmra.mxu3 %v3708_v58  ;;  %v4122_v35 = vld [vmem:[#allocation13_spill] sm:$0xff] }
 0x22f   : > { %v2040_v4 = vpop.f32.mrf.mxu2  ;;  %v2266_v3 = vpop.f32.mrf.mxu0 }
 0x230   : > { %v2041_v12 = vadd.f32 %v2040_v4, %v1928_v31  ;;  %v4124_v4 = vld [vmem:[#allocation8_spill] sm:$0xff] }
 0x231   : > { %v1930_v40 = vpop.f32.mrf.mxu1  ;;  %v2153_v51 = vpop.f32.mrf.mxu3 }
 0x232   : > { %v2154_v27 = vadd.f32 %v2153_v51, %v2041_v12  ;;  %2313 = vmatmul.f32.gmra.mxu0 %v3734_v0  ;;  %v1931_v53 = vadd.f32 %v1930_v40, %v3700_v63  ;;  %v4125_v12 = vld [vmem:[#allocation12_spill] sm:$0xff] }
 0x234   : > { %v2267_v39 = vadd.f32 %v2266_v3, %v2154_v27  ;;  %1977 = vmatmul.f32.gmra.mxu1 %v2586_v25  ;;  %2090 = vmatmul.f32.gmra.mxu2 %v2616_v43  ;;  %v880_v25 = vld [vmem:[%s3792_s11 + $0x2] sm:$0xff] }
 0x236   : > { %2348 = vst [vmem:[%s3939_s12 + $0x38] sm:$0xff] %v2267_v39  ;;  %2203 = vmatmul.f32.gmra.mxu3 %v3728_v62 }
 0x237   : > { %v2043_v58 = vpop.f32.mrf.mxu2  ;;  %v2269_v10 = vpop.f32.mrf.mxu0 }
 0x238   : > { %v2044_v54 = vadd.f32 %v2043_v58, %v1931_v53  ;;  %v4126_v58 = vld [vmem:[#allocation14_spill] sm:$0xff] }
 0x239   : > { %v1933_v22 = vpop.f32.mrf.mxu1  ;;  %v2156_v33 = vpop.f32.mrf.mxu3 }
 0x23a   : > { %v2157_v8 = vadd.f32 %v2156_v33, %v2044_v54  ;;  %2316 = vmatmul.f32.gmra.mxu0 %v3754_v47  ;;  %v1934_v56 = vadd.f32 %v1933_v22, %v3717_v46 }
 0x23c   : > { %v2270_v9 = vadd.f32 %v2269_v10, %v2157_v8  ;;  %1980 = vmatmul.f32.gmra.mxu1 %v3734_v0  ;;  %2093 = vmatmul.f32.gmra.mxu2 %v3738_v26  ;;  %v4127_v10 = vld [vmem:[#allocation11_spill] sm:$0xff] }
 0x23d   : > { %v881_v8 = vld [vmem:[%s3792_s11 + $0xa] sm:$0xff] }
 0x23e   : > { %2349 = vst [vmem:[%s3939_s12 + $0x40] sm:$0xff] %v2270_v9  ;;  %2206 = vmatmul.f32.gmra.mxu3 %v3751_v15 }
 0x23f   : > { %v2046_v63 = vpop.f32.mrf.mxu2  ;;  %v2272_v62 = vpop.f32.mrf.mxu0 }
 0x240   : > { %v2047_v21 = vadd.f32 %v2046_v63, %v1934_v56 }
 0x241   : > { %v1936_v57 = vpop.f32.mrf.mxu1  ;;  %v2159_v18 = vpop.f32.mrf.mxu3 }
 0x242   : > { %v2160_v42 = vadd.f32 %v2159_v18, %v2047_v21  ;;  %2319 = vmatmul.f32.gmra.mxu0 %v3771_v49  ;;  %v1937_v0 = vadd.f32 %v1936_v57, %v3742_v29  ;;  %v4121_v29 = vld [vmem:[#allocation9_spill] sm:$0xff] }
 0x243   : > { %v818_v57 = vld [vmem:[%s3792_s11 + $0x19] sm:$0xff] }
 0x244   : > { %v2273_v32 = vadd.f32 %v2272_v62, %v2160_v42  ;;  %1983 = vmatmul.f32.gmra.mxu1 %v3754_v47  ;;  %2096 = vmatmul.f32.gmra.mxu2 %v3758_v41  ;;  %v4119_v47 = vld [vmem:[#allocation7_spill] sm:$0xff]  ;;  %v4120_v41 = vld [vmem:[#allocation6_spill] sm:$0xff]  ;;  %v753_v62 = vld [vmem:[%s3792_s11 + $0x18] sm:$0xff] }
 0x245   : > { %v4128_v42 = vld [vmem:[#allocation15_spill] sm:$0xff] }
 0x246   : > { %2350 = vst [vmem:[%s3939_s12 + $0x48] sm:$0xff] %v2273_v32  ;;  %2209 = vmatmul.f32.gmra.mxu3 %v3768_v14 }
 0x247   : > { %v2049_v46 = vpop.f32.mrf.mxu2  ;;  %v2275_v26 = vpop.f32.mrf.mxu0 }
 0x248   : > { %v2050_v15 = vadd.f32 %v2049_v46, %v1937_v0  ;;  %v882_v46 = vld [vmem:[%s3792_s11 + $0x1a] sm:$0xff] }
 0x249   : > { %v1939_v48 = vpop.f32.mrf.mxu1  ;;  %v2162_v60 = vpop.f32.mrf.mxu3 }
 0x24a   : > { %v2163_v37 = vadd.f32 %v2162_v60, %v2050_v15  ;;  %2322 = vmatmul.f32.gmra.mxu0 %v3795_v17  ;;  %v1940_v55 = vadd.f32 %v1939_v48, %v4120_v41  ;;  %v754_v60 = vld [vmem:[%s3792_s11 + $0x20] sm:$0xff]  ;;  %v4129_v41 = vld [vmem:[#allocation16_spill] sm:$0xff] }
 0x24c   : > { %v2276_v28 = vadd.f32 %v2275_v26, %v2163_v37  ;;  %1986 = vmatmul.f32.gmra.mxu1 %v3771_v49  ;;  %2099 = vmatmul.f32.gmra.mxu2 %v4119_v47  ;;  %v4123_v49 = vld [vmem:[#allocation10_spill] sm:$0xff] }
 0x24e   : > { %2351 = vst [vmem:[%s3939_s12 + $0x50] sm:$0xff] %v2276_v28  ;;  %2212 = vmatmul.f32.gmra.mxu3 %v4121_v29  ;;  %v819_v28 = vld [vmem:[%s3792_s11 + $0x21] sm:$0xff] }
 0x24f   : > { %v2052_v14 = vpop.f32.mrf.mxu2  ;;  %v2278_v1 = vpop.f32.mrf.mxu0 }
 0x250   : > { %v2053_v20 = vadd.f32 %v2052_v14, %v1940_v55 }
 0x251   : > { %v1942_v34 = vpop.f32.mrf.mxu1  ;;  %v2165_v30 = vpop.f32.mrf.mxu3 }
 0x252   : > { %v2166_v6 = vadd.f32 %v2165_v30, %v2053_v20  ;;  %2325 = vmatmul.f32.gmra.mxu0 %v4122_v35  ;;  %v1943_v3 = vadd.f32 %v1942_v34, %v4124_v4 }
 0x254   : > { %v2279_v31 = vadd.f32 %v2278_v1, %v2166_v6  ;;  %1989 = vmatmul.f32.gmra.mxu1 %v3795_v17  ;;  %2102 = vmatmul.f32.gmra.mxu2 %v4123_v49  ;;  %v883_v1 = vld [vmem:[%s3792_s11 + $0x22] sm:$0xff] }
 0x256   : > { %2352 = vst [vmem:[%s3939_s12 + $0x58] sm:$0xff] %v2279_v31  ;;  %2215 = vmatmul.f32.gmra.mxu3 %v4125_v12 }
 0x257   : > { %v2055_v40 = vpop.f32.mrf.mxu2  ;;  %v2281_v51 = vpop.f32.mrf.mxu0 }
 0x258   : > { %v2056_v43 = vadd.f32 %v2055_v40, %v1943_v3 }
 0x259   : > { %v1945_v27 = vpop.f32.mrf.mxu1  ;;  %v2168_v39 = vpop.f32.mrf.mxu3 }
 0x25a   : > { %v2169_v53 = vadd.f32 %v2168_v39, %v2056_v43  ;;  %2328 = vmatmul.f32.gmra.mxu0 %v880_v25  ;;  %v1946_v54 = vadd.f32 %v1945_v27, %v4127_v10 }
 0x25c   : > { %v2282_v17 = vadd.f32 %v2281_v51, %v2169_v53  ;;  %1992 = vmatmul.f32.gmra.mxu1 %v4122_v35  ;;  %2105 = vmatmul.f32.gmra.mxu2 %v4126_v58 }
 0x25e   : > { %2353 = vst [vmem:[%s3939_s12 + $0x60] sm:$0xff] %v2282_v17  ;;  %2218 = vmatmul.f32.gmra.mxu3 %v3826_v44 }
 0x25f   : > { %v2058_v22 = vpop.f32.mrf.mxu2  ;;  %v2284_v33 = vpop.f32.mrf.mxu0 }
 0x260   : > { %v2059_v9 = vadd.f32 %v2058_v22, %v1946_v54 }
 0x261   : > { %v1948_v56 = vpop.f32.mrf.mxu1  ;;  %v2171_v63 = vpop.f32.mrf.mxu3 }
 0x262   : > { %v2172_v21 = vadd.f32 %v2171_v63, %v2059_v9  ;;  %2331 = vmatmul.f32.gmra.mxu0 %v881_v8  ;;  %v1949_v32 = vadd.f32 %v1948_v56, %v4128_v42 }
 0x264   : > { %v2285_v18 = vadd.f32 %v2284_v33, %v2172_v21  ;;  %1995 = vmatmul.f32.gmra.mxu1 %v880_v25  ;;  %2108 = vmatmul.f32.gmra.mxu2 %v753_v62 }
 0x266   : > { %2354 = vst [vmem:[%s3939_s12 + $0x68] sm:$0xff] %v2285_v18  ;;  %2221 = vmatmul.f32.gmra.mxu3 %v818_v57 }
 0x267   : > { %v2061_v44 = vpop.f32.mrf.mxu2  ;;  %v2287_v0 = vpop.f32.mrf.mxu0 }
 0x268   : > { %v2062_v26 = vadd.f32 %v2061_v44, %v1949_v32 }
 0x269   : > { %v1951_v15 = vpop.f32.mrf.mxu1  ;;  %v2174_v48 = vpop.f32.mrf.mxu3 }
 0x26a   : > { %v2175_v37 = vadd.f32 %v2174_v48, %v2062_v26  ;;  %2334 = vmatmul.f32.gmra.mxu0 %v882_v46  ;;  %v1952_v55 = vadd.f32 %v1951_v15, %v4129_v41 }
 0x26c   : > { %v2288_v47 = vadd.f32 %v2287_v0, %v2175_v37  ;;  %1998 = vmatmul.f32.gmra.mxu1 %v881_v8  ;;  %2111 = vmatmul.f32.gmra.mxu2 %v754_v60 }
 0x26e   : > { %2355 = vst [vmem:[%s3939_s12 + $0x70] sm:$0xff] %v2288_v47  ;;  %2224 = vmatmul.f32.gmra.mxu3 %v819_v28 }
 0x26f   : > { %v2064_v29 = vpop.f32.mrf.mxu2  ;;  %v2290_v14 = vpop.f32.mrf.mxu0 }
 0x270   : > { %v2065_v20 = vadd.f32 %v2064_v29, %v1952_v55 }
 0x271   : > { %v1954_v34 = vpop.f32.mrf.mxu1  ;;  %v2177_v30 = vpop.f32.mrf.mxu3 }
 0x272   : > { %v2178_v6 = vadd.f32 %v2177_v30, %v2065_v20  ;;  %2337 = vmatmul.f32.gmra.mxu0 %v883_v1  ;;  %v1955_v31 = vadd.f32 %v1954_v34, %v3839_v7 }
 0x274   : > { %v2291_v35 = vadd.f32 %v2290_v14, %v2178_v6 }
 0x276   : > { %2356 = vst [vmem:[%s3939_s12 + $0x78] sm:$0xff] %v2291_v35 }
 0x277   : > { %v2067_v49 = vpop.f32.mrf.mxu2  ;;  %v2293_v4 = vpop.f32.mrf.mxu0 }
 0x278   : > { %v2068_v3 = vadd.f32 %v2067_v49, %v1955_v31 }
 0x279   : > { %v1957_v12 = vpop.f32.mrf.mxu1  ;;  %v2180_v40 = vpop.f32.mrf.mxu3 }
 0x27a   : > { %v2181_v51 = vadd.f32 %v2180_v40, %v2068_v3  ;;  %v1958_v43 = vadd.f32 %v1957_v12, %v3845_v50 }
 0x27c   : > { %v2294_v25 = vadd.f32 %v2293_v4, %v2181_v51 }
 0x27e   : > { %2357 = vst [vmem:[%s3939_s12 + $0x80] sm:$0xff] %v2294_v25 }
 0x27f   : > { %v2070_v27 = vpop.f32.mrf.mxu2  ;;  %v2296_v39 = vpop.f32.mrf.mxu0 }
 0x280   : > { %v2071_v53 = vadd.f32 %v2070_v27, %v1958_v43 }
 0x281   : > { %v1960_v17 = vpop.f32.mrf.mxu1  ;;  %v2183_v58 = vpop.f32.mrf.mxu3 }
 0x282   : > { %v2184_v10 = vadd.f32 %v2183_v58, %v2071_v53  ;;  %v1961_v54 = vadd.f32 %v1960_v17, %v3851_v24 }
 0x284   : > { %v2297_v7 = vadd.f32 %v2296_v39, %v2184_v10 }
 0x286   : > { %2358 = vst [vmem:[%s3939_s12 + $0x88] sm:$0xff] %v2297_v7 }
 0x287   : > { %v2073_v22 = vpop.f32.mrf.mxu2  ;;  %v2299_v33 = vpop.f32.mrf.mxu0 }
 0x288   : > { %v2074_v8 = vadd.f32 %v2073_v22, %v1961_v54 }
 0x289   : > { %v1963_v9 = vpop.f32.mrf.mxu1  ;;  %v2186_v56 = vpop.f32.mrf.mxu3 }
 0x28a   : > { %v2187_v63 = vadd.f32 %v2186_v56, %v2074_v8  ;;  %v1964_v62 = vadd.f32 %v1963_v9, %v3857_v59 }
 0x28c   : > { %v2300_v50 = vadd.f32 %v2299_v33, %v2187_v63 }
 0x28e   : > { %2359 = vst [vmem:[%s3939_s12 + $0x90] sm:$0xff] %v2300_v50 }
 0x28f   : > { %v2076_v21 = vpop.f32.mrf.mxu2  ;;  %v2302_v57 = vpop.f32.mrf.mxu0 }
 0x290   : > { %v2077_v18 = vadd.f32 %v2076_v21, %v1964_v62 }
 0x291   : > { %v1966_v42 = vpop.f32.mrf.mxu1  ;;  %v2189_v32 = vpop.f32.mrf.mxu3 }
 0x292   : > { %v2190_v44 = vadd.f32 %v2189_v32, %v2077_v18  ;;  %v1967_v0 = vadd.f32 %v1966_v42, %v3863_v13 }
 0x294   : > { %v2303_v24 = vadd.f32 %v2302_v57, %v2190_v44 }
 0x296   : > { %2360 = vst [vmem:[%s3939_s12 + $0x98] sm:$0xff] %v2303_v24 }
 0x297   : > { %v2079_v46 = vpop.f32.mrf.mxu2  ;;  %v2305_v26 = vpop.f32.mrf.mxu0 }
 0x298   : > { %v2080_v15 = vadd.f32 %v2079_v46, %v1967_v0 }
 0x299   : > { %v1969_v48 = vpop.f32.mrf.mxu1  ;;  %v2192_v60 = vpop.f32.mrf.mxu3 }
 0x29a   : > { %v2193_v37 = vadd.f32 %v2192_v60, %v2080_v15  ;;  %v1970_v28 = vadd.f32 %v1969_v48, %v3869_v61 }
 0x29c   : > { %v2306_v59 = vadd.f32 %v2305_v26, %v2193_v37 }
 0x29e   : > { %2361 = vst [vmem:[%s3939_s12 + $0xa0] sm:$0xff] %v2306_v59 }
 0x29f   : > { %v2082_v47 = vpop.f32.mrf.mxu2  ;;  %v2308_v41 = vpop.f32.mrf.mxu0 }
 0x2a0   : > { %v2083_v55 = vadd.f32 %v2082_v47, %v1970_v28 }
 0x2a1   : > { %v1972_v29 = vpop.f32.mrf.mxu1  ;;  %v2195_v14 = vpop.f32.mrf.mxu3 }
 0x2a2   : > { %v2196_v1 = vadd.f32 %v2195_v14, %v2083_v55  ;;  %v1973_v20 = vadd.f32 %v1972_v29, %v3875_v19 }
 0x2a4   : > { %v2309_v13 = vadd.f32 %v2308_v41, %v2196_v1 }
 0x2a6   : > { %2362 = vst [vmem:[%s3939_s12 + $0xa8] sm:$0xff] %v2309_v13 }
 0x2a7   : > { %v2085_v34 = vpop.f32.mrf.mxu2  ;;  %v2311_v30 = vpop.f32.mrf.mxu0 }
 0x2a8   : > { %v2086_v6 = vadd.f32 %v2085_v34, %v1973_v20 }
 0x2a9   : > { %v1975_v35 = vpop.f32.mrf.mxu1  ;;  %v2198_v31 = vpop.f32.mrf.mxu3 }
 0x2aa   : > { %v2199_v49 = vadd.f32 %v2198_v31, %v2086_v6  ;;  %v1976_v4 = vadd.f32 %v1975_v35, %v3881_v38 }
 0x2ac   : > { %v2312_v61 = vadd.f32 %v2311_v30, %v2199_v49 }
 0x2ae   : > { %2363 = vst [vmem:[%s3939_s12 + $0xb0] sm:$0xff] %v2312_v61 }
 0x2af   : > { %v2088_v3 = vpop.f32.mrf.mxu2  ;;  %v2314_v12 = vpop.f32.mrf.mxu0 }
 0x2b0   : > { %v2089_v40 = vadd.f32 %v2088_v3, %v1976_v4 }
 0x2b1   : > { %v1978_v51 = vpop.f32.mrf.mxu1  ;;  %v2201_v25 = vpop.f32.mrf.mxu3 }
 0x2b2   : > { %v2202_v43 = vadd.f32 %v2201_v25, %v2089_v40  ;;  %v1979_v27 = vadd.f32 %v1978_v51, %v3887_v52 }
 0x2b4   : > { %v2315_v19 = vadd.f32 %v2314_v12, %v2202_v43 }
 0x2b6   : > { %2364 = vst [vmem:[%s3939_s12 + $0xb8] sm:$0xff] %v2315_v19 }
 0x2b7   : > { %v2091_v39 = vpop.f32.mrf.mxu2  ;;  %v2317_v53 = vpop.f32.mrf.mxu0 }
 0x2b8   : > { %v2092_v17 = vadd.f32 %v2091_v39, %v1979_v27 }
 0x2b9   : > { %v1981_v58 = vpop.f32.mrf.mxu1  ;;  %v2204_v10 = vpop.f32.mrf.mxu3 }
 0x2ba   : > { %v2205_v7 = vadd.f32 %v2204_v10, %v2092_v17  ;;  %v1982_v54 = vadd.f32 %v1981_v58, %v3893_v2 }
 0x2bc   : > { %v2318_v38 = vadd.f32 %v2317_v53, %v2205_v7 }
 0x2be   : > { %2365 = vst [vmem:[%s3939_s12 + $0xc0] sm:$0xff] %v2318_v38 }
 0x2bf   : > { %v2094_v22 = vpop.f32.mrf.mxu2  ;;  %v2320_v33 = vpop.f32.mrf.mxu0 }
 0x2c0   : > { %v2095_v8 = vadd.f32 %v2094_v22, %v1982_v54 }
 0x2c1   : > { %v1984_v9 = vpop.f32.mrf.mxu1  ;;  %v2207_v56 = vpop.f32.mrf.mxu3 }
 0x2c2   : > { %v2208_v63 = vadd.f32 %v2207_v56, %v2095_v8  ;;  %v1985_v50 = vadd.f32 %v1984_v9, %v3899_v11 }
 0x2c4   : > { %v2321_v52 = vadd.f32 %v2320_v33, %v2208_v63 }
 0x2c6   : > { %2366 = vst [vmem:[%s3939_s12 + $0xc8] sm:$0xff] %v2321_v52 }
 0x2c7   : > { %v2097_v62 = vpop.f32.mrf.mxu2  ;;  %v2323_v21 = vpop.f32.mrf.mxu0 }
 0x2c8   : > { %v2098_v57 = vadd.f32 %v2097_v62, %v1985_v50 }
 0x2c9   : > { %v1987_v18 = vpop.f32.mrf.mxu1  ;;  %v2210_v42 = vpop.f32.mrf.mxu3 }
 0x2ca   : > { %v2211_v32 = vadd.f32 %v2210_v42, %v2098_v57  ;;  %v1988_v44 = vadd.f32 %v1987_v18, %v3905_v23 }
 0x2cc   : > { %v2324_v2 = vadd.f32 %v2323_v21, %v2211_v32 }
 0x2ce   : > { %2367 = vst [vmem:[%s3939_s12 + $0xd0] sm:$0xff] %v2324_v2 }
 0x2cf   : > { %v2100_v24 = vpop.f32.mrf.mxu2  ;;  %v2326_v0 = vpop.f32.mrf.mxu0 }
 0x2d0   : > { %v2101_v46 = vadd.f32 %v2100_v24, %v1988_v44 }
 0x2d1   : > { %v1990_v26 = vpop.f32.mrf.mxu1  ;;  %v2213_v15 = vpop.f32.mrf.mxu3 }
 0x2d2   : > { %v2214_v48 = vadd.f32 %v2213_v15, %v2101_v46  ;;  %v1991_v60 = vadd.f32 %v1990_v26, %v3911_v36 }
 0x2d4   : > { %v2327_v11 = vadd.f32 %v2326_v0, %v2214_v48 }
 0x2d6   : > { %2368 = vst [vmem:[%s3939_s12 + $0xd8] sm:$0xff] %v2327_v11 }
 0x2d7   : > { %v2103_v37 = vpop.f32.mrf.mxu2  ;;  %v2329_v59 = vpop.f32.mrf.mxu0 }
 0x2d8   : > { %v2104_v28 = vadd.f32 %v2103_v37, %v1991_v60 }
 0x2d9   : > { %v1993_v47 = vpop.f32.mrf.mxu1  ;;  %v2216_v41 = vpop.f32.mrf.mxu3 }
 0x2da   : > { %v2217_v55 = vadd.f32 %v2216_v41, %v2104_v28  ;;  %v1994_v29 = vadd.f32 %v1993_v47, %v3917_v45 }
 0x2dc   : > { %v2330_v23 = vadd.f32 %v2329_v59, %v2217_v55 }
 0x2de   : > { %2369 = vst [vmem:[%s3939_s12 + $0xe0] sm:$0xff] %v2330_v23 }
 0x2df   : > { %v2106_v14 = vpop.f32.mrf.mxu2  ;;  %v2332_v1 = vpop.f32.mrf.mxu0 }
 0x2e0   : > { %v2107_v13 = vadd.f32 %v2106_v14, %v1994_v29 }
 0x2e1   : > { %v1996_v20 = vpop.f32.mrf.mxu1  ;;  %v2219_v34 = vpop.f32.mrf.mxu3 }
 0x2e2   : > { %v2220_v36 = vadd.f32 %v2219_v34, %v2107_v13  ;;  %v1997_v6 = vadd.f32 %v1996_v20, %v3923_v5 }
 0x2e4   : > { %v2333_v30 = vadd.f32 %v2332_v1, %v2220_v36 }
 0x2e6   : > { %2370 = vst [vmem:[%s3939_s12 + $0xe8] sm:$0xff] %v2333_v30 }
 0x2e7   : > { %v2109_v35 = vpop.f32.mrf.mxu2  ;;  %v2335_v31 = vpop.f32.mrf.mxu0 }
 0x2e8   : > { %v2110_v49 = vadd.f32 %v2109_v35, %v1997_v6 }
 0x2e9   : > { %v2222_v61 = vpop.f32.mrf.mxu3  ;;  %v1999_v45 = vpop.f32.mrf.mxu1 }
 0x2ea   : > { %v2223_v4 = vadd.f32 %v2222_v61, %v2110_v49  ;;  %v2000_v12 = vadd.f32 %v1999_v45, %v3929_v16 }
 0x2ec   : > { %v2336_v3 = vadd.f32 %v2335_v31, %v2223_v4 }
 0x2ee   : > { %2371 = vst [vmem:[%s3939_s12 + $0xf0] sm:$0xff] %v2336_v3 }
 0x2ef   : > { %v2112_v40 = vpop.f32.mrf.mxu2  ;;  %v2338_v25 = vpop.f32.mrf.mxu0 }
 0x2f0   : > { %v2113_v5 = vadd.f32 %v2112_v40, %v2000_v12 }
 0x2f1   : > { %v2225_v51 = vpop.f32.mrf.mxu3 }
 0x2f2   : > { %v2226_v43 = vadd.f32 %v2225_v51, %v2113_v5 }
 0x2f4   : > { %v2339_v19 = vadd.f32 %v2338_v25, %v2226_v43 }
 0x2f6   : > { %2372 = vst [vmem:[%s3939_s12 + $0xf8] sm:$0xff] %v2339_v19 }
 0x2f7   : > { %2820 = shalt.err (!%p2817_p5)
}
 0x2f8   : > { %s2873_s9 = smov 128   ;;  %s2874_s21 = smov 8  }
 0x2f9   : > { %2734 = dma.vmem_to_hbm [thread:$0]  (%p2940_p4), %s2389_s24, 4096, %s2391_s26, %s2374_s18, %s2873_s9, %s2873_s9, %s2874_s21  }
 0x2fa PF: > { %p2741_p6 = scmp.ge.s32.totalorder %s2871_s20, 2  ;;  %s2405_s12 = sand.u32 1, %s2851_s15  }
 0x2fb   : > { %s2406_s6 = scalar_lea.sflag [#allocation4], %s2405_s12 }
 0x2fc   : > { %p2737_p7 = pnand %p2741_p6, %p2947_p8 }
 0x2fe   : > { %p2738_p9 = pneg %p2737_p7 }
 0x300   : > { %2846 = dma.done.wait (%p2738_p9), %s2406_s6, 4096  }
 0x301   : > { %2848 = vsyncadd (%p2738_p9), %s2406_s6, 4294963200  ;;  %s17_s20 = sadd.s32 1, %s2871_s20   ;;  %s4130_s15 = smov %s2855_s16 }
 0x302   : > { %p14_p10 = scmp.ge.s32.totalorder %s17_s20, 4   ;;  %s4131_s16 = smov %s2859_s17 }
 0x303   : > { %s4132_s17 = smov %s2953_s28  ;;  %s4133_s18 = smov %s2867_s19 }
 0x304   : > { %s4134_s19 = smov %s4136_s23  ;;  %16 = sbr.rel (!%p14_p10) target bundleno = 4 (0x4), region = 78 }
 0x309   :  { %2412 = vsyncpa [#allocation4], 1 }
 0x30a   :  { %2414 = vsyncpa [#allocation4 + $0x1], 1 }

</bundles_post_ra>
